<compile_context>
chip_gen: v5e
topology: v5e:2x2
jax: 0.10.0
libtpu: 0.0.40
codegen_flags: <defaults>
</compile_context>

<pallas_src>
import jax
import jax.numpy as jnp
from jax.experimental import pallas as pl
from jax.experimental.pallas import tpu as pltpu  # noqa: F401  (kept for parity; not required here)

# ---- small, deterministic config (module constants scaled down) ----
BATCH = 2              # runtime batch B
T_SEQ = 16             # sequence length T (<= BLOCK_SIZE)
N_EMBD = 32            # n_embd
NUM_HEADS = 4
HEAD_SIZE = 8
BLOCK_SIZE = 16        # causal-mask / gravity chunk size
GRAV_BATCH = 4         # leading dim of the gravity_target parameter ("batch_size" constant)
GRAVITY_STRENGTH = 5.25
GRAVITY_ON = True
NEG_INF = -1e30        # large finite negative (safer than -inf for fully masked rows)
SCALE = float(HEAD_SIZE) ** -0.5
# TODO(synk): the torch.rand(1) coin flip gating the gravity add and nn.Dropout are stochastic;
#             both are treated deterministically here (gravity always added — it is a per-row
#             constant, hence softmax-invariant — and dropout = identity / eval mode).


# ---------------- fused Pallas kernel (single grid step, everything VMEM-resident) ----------------
def _fused_mha_kernel(x_ref, wqk_ref, wvp_ref, bproj_ref, bias_ref, o_ref):
    # x: (B*T, C) bf16, wqk: (C, 2*H*D) bf16, wvp: (H, C, C) bf16,
    # bproj: (1, C) f32, bias: (T, T) f32, o: (B*T, C) f32
    B, T, C, H, D = BATCH, T_SEQ, N_EMBD, NUM_HEADS, HEAD_SIZE
    HD = H * D

    x = x_ref[...]                                                        # (B*T, C) bf16
    # One fused QK matmul for all batches/heads (bf16 MXU, f32 accumulate).
    qk = jnp.dot(x, wqk_ref[...], preferred_element_type=jnp.float32)    # (B*T, 2*H*D) f32
    bias = bias_ref[...]                                                  # gravity + causal, f32

    accs = [jnp.zeros((T, C), jnp.float32) for _ in range(B)]
    for h in range(H):
        # W_proj folded into W_v: per-head projected values for all batch rows at once.
        vp = jnp.dot(x, wvp_ref[h], preferred_element_type=jnp.float32)   # (B*T, C) f32
        for b in range(B):
            r0 = b * T                                                     # sublane-aligned (16 % 8 == 0)
            q = qk[r0:r0 + T, h * D:(h + 1) * D]                           # (T, D) f32
            k = qk[r0:r0 + T, HD + h * D:HD + (h + 1) * D]                 # (T, D) f32
            s = jnp.dot(q, k.T, preferred_element_type=jnp.float32) * SCALE + bias
            s = s - jnp.max(s, axis=-1, keepdims=True)
            e = jnp.exp(s)
            p = e / jnp.sum(e, axis=-1, keepdims=True)                     # exact divide (f32)
            accs[b] = accs[b] + jnp.dot(p, vp[r0:r0 + T, :],
                                        preferred_element_type=jnp.float32)
    # b_proj added once at the final store; single lane-partial (32/128) store is fine at this size.
    o_ref[...] = jnp.concatenate(accs, axis=0) + bproj_ref[...]


# ---------------- glue ----------------
def compute_gravity_term(T, gravity_target, gravity_strength):
    """Faithful port of Head.compute_gravity_term; returns (1, T, 1)."""
    gt = gravity_target.reshape(-1, 1, 1)                                  # (N, 1, 1)
    gt = jnp.broadcast_to(gt, (gt.shape[0], T, 1))
    out = jnp.zeros((1, T, 1), jnp.float32)
    for start in range(0, T, BLOCK_SIZE):
        end = min(start + BLOCK_SIZE, T)
        pos = jnp.arange(start, end, dtype=jnp.float32).reshape(1, -1, 1)
        d = jnp.abs(pos - gt[:, start:end, :])
        dsq = d * d
        out = out.at[:, start:end, :].set(
            -gravity_strength / (dsq + 1e-6).sum(axis=0, keepdims=True))
    return out


def fuse_params(params):
    """One-time weight fusion: heads concatenated for Q/K, W_proj folded into W_v, bf16 cast."""
    H, D, C = NUM_HEADS, HEAD_SIZE, N_EMBD

    def cat_heads(w):                                     # (H, C, D) -> (C, H*D)
        return jnp.transpose(w, (1, 0, 2)).reshape(C, H * D)

    wqk = jnp.concatenate([cat_heads(params["wq"]), cat_heads(params["wk"])], axis=-1)   # (C, 2*H*D)
    wproj = params["w_proj"]                                                              # (H*D, C)
    wvp = jnp.stack([params["wv"][h] @ wproj[h * D:(h + 1) * D, :] for h in range(H)])    # (H, C, C)
    return {
        "wqk": wqk.astype(jnp.bfloat16),
        "wvp": wvp.astype(jnp.bfloat16),
        "b_proj": params["b_proj"].astype(jnp.float32),
        "gravity_target": params["gravity_target"],
    }


def multi_head_attention(x, fused):
    B, T, C = x.shape
    assert (B, T, C) == (BATCH, T_SEQ, N_EMBD)
    H, D = NUM_HEADS, HEAD_SIZE

    # Additive (T, T) attention bias: gravity term on unmasked entries, -1e30 above diagonal.
    if GRAVITY_ON:
        grav = compute_gravity_term(T, fused["gravity_target"], GRAVITY_STRENGTH)[0]  # (T, 1)
    else:
        grav = jnp.zeros((T, 1), jnp.float32)
    row = jnp.arange(T, dtype=jnp.int32)[:, None]
    col = jnp.arange(T, dtype=jnp.int32)[None, :]
    # TODO(synk): for large T, build the causal mask in-kernel from broadcasted_iota plus a
    #             (T,1) gravity column instead of shipping a dense (T,T) f32 bias (v7x VMEM).
    bias = jnp.where(col <= row, grav, jnp.float32(NEG_INF)).astype(jnp.float32)       # (T, T)

    x2d = x.reshape(B * T, C).astype(jnp.bfloat16)        # batch merged into rows, bf16 operand

    out = pl.pallas_call(
        _fused_mha_kernel,
        out_shape=jax.ShapeDtypeStruct((B * T, C), jnp.float32),
        grid=(1,),                                         # single grid step (no megacore split)
        in_specs=[
            pl.BlockSpec((B * T, C), lambda i: (0, 0)),            # x, all batches
            pl.BlockSpec((C, 2 * H * D), lambda i: (0, 0)),        # fused Wq|Wk (resident)
            pl.BlockSpec((H, C, C), lambda i: (0, 0, 0)),          # folded Wv@Wproj per head
            pl.BlockSpec((1, C), lambda i: (0, 0)),                # b_proj
            pl.BlockSpec((T, T), lambda i: (0, 0)),                # gravity + causal bias
        ],
        out_specs=pl.BlockSpec((B * T, C), lambda i: (0, 0)),
    )(x2d, fused["wqk"], fused["wvp"], fused["b_proj"], bias)
    # final dropout is identity in eval mode
    return out.reshape(B, T, C)


def init_params(key):
    kq, kk, kv, kw, kb = jax.random.split(key, 5)
    bound_head = 1.0 / float(N_EMBD) ** 0.5
    bound_proj = 1.0 / float(NUM_HEADS * HEAD_SIZE) ** 0.5

    def u(k, shp, b):
        w = jax.random.uniform(k, shp, jnp.float32, -b, b)
        # Round test weights to bf16-representable values so the kernel's bf16 operands are
        # bit-identical to what the f32 reference consumes (keeps the correctness check tight).
        return w.astype(jnp.bfloat16).astype(jnp.float32)

    return {
        "wq": u(kq, (NUM_HEADS, N_EMBD, HEAD_SIZE), bound_head),
        "wk": u(kk, (NUM_HEADS, N_EMBD, HEAD_SIZE), bound_head),
        "wv": u(kv, (NUM_HEADS, N_EMBD, HEAD_SIZE), bound_head),
        "w_proj": u(kw, (NUM_HEADS * HEAD_SIZE, N_EMBD), bound_proj),
        "b_proj": u(kb, (1, N_EMBD), bound_proj),
        "gravity_target": jnp.full((GRAV_BATCH, BLOCK_SIZE, BLOCK_SIZE),
                                   BLOCK_SIZE // 2, dtype=jnp.float32),
    }


def reference(x, params):
    """Pure-JAX f32 reference using the ORIGINAL (unfused) weight layout / module math."""
    B, T, C = x.shape
    grav = compute_gravity_term(T, params["gravity_target"], GRAVITY_STRENGTH)  # (1, T, 1)
    tril = jnp.tril(jnp.ones((T, T), jnp.float32))
    outs = []
    for h in range(NUM_HEADS):
        q = x @ params["wq"][h]
        k = x @ params["wk"][h]
        v = x @ params["wv"][h]
        w = (q @ jnp.swapaxes(k, -2, -1)) * (HEAD_SIZE ** -0.5)
        if GRAVITY_ON:
            w = w + grav
        w = jnp.where(tril == 0, -jnp.inf, w)
        w = jax.nn.softmax(w, axis=-1)
        outs.append(w @ v)
    cat = jnp.concatenate(outs, axis=-1)
    return cat @ params["w_proj"] + params["b_proj"]


if __name__ == "__main__":
    root = jax.random.PRNGKey(0)
    kx, kp = jax.random.split(root)
    params = init_params(kp)
    fused = fuse_params(params)          # one-time fusion: QK concat, Wv@Wproj fold, bf16 cast
    x = jax.random.normal(kx, (BATCH, T_SEQ, N_EMBD), dtype=jnp.float32)
    # Make the test input bf16-representable so casting x inside the wrapper is lossless.
    x = x.astype(jnp.bfloat16).astype(jnp.float32)

    out = jax.block_until_ready(multi_head_attention(x, fused))
    ref = reference(x, params)

    assert out.shape == (BATCH, T_SEQ, N_EMBD)
    # Remaining divergence vs the f32 reference: bf16 rounding of the folded Wv@Wproj weight
    # and f32 accumulation-order differences (softmax, scores and bias are exact f32).
    assert jnp.allclose(out, ref, atol=3e-2, rtol=3e-2), "Pallas output mismatch vs reference"
    print("KERNEL_OK")
</pallas_src>

<mosaic_0001>
module attributes {stable_mosaic.version = 11 : i64} {
  func.func @_fused_mha_kernel(%arg0: i32, %arg1: memref<32x32xbf16, #tpu.memory_space<vmem>>, %arg2: memref<32x64xbf16, #tpu.memory_space<vmem>>, %arg3: memref<4x32x32xbf16, #tpu.memory_space<vmem>>, %arg4: memref<1x32xf32, #tpu.memory_space<vmem>>, %arg5: memref<16x16xf32, #tpu.memory_space<vmem>>, %arg6: memref<32x32xf32, #tpu.memory_space<vmem>>) attributes {dimension_semantics = [#tpu.dimension_semantics<arbitrary>], iteration_bounds = array<i64: 1>, scalar_prefetch = 0 : i64, scratch_operands = 0 : i64, tpu.core_type = #tpu.core_type<tc>, window_params = [{pipeline_mode = #tpu.pipeline_mode<synchronous>, transform_indices = @transform_0, window_bounds = array<i64: 32, 32>}, {pipeline_mode = #tpu.pipeline_mode<synchronous>, transform_indices = @transform_1, window_bounds = array<i64: 32, 64>}, {pipeline_mode = #tpu.pipeline_mode<synchronous>, transform_indices = @transform_2, window_bounds = array<i64: 4, 32, 32>}, {pipeline_mode = #tpu.pipeline_mode<synchronous>, transform_indices = @transform_3, window_bounds = array<i64: 1, 32>}, {pipeline_mode = #tpu.pipeline_mode<synchronous>, transform_indices = @transform_4, window_bounds = array<i64: 16, 16>}, {pipeline_mode = #tpu.pipeline_mode<synchronous>, transform_indices = @transform_5, window_bounds = array<i64: 32, 32>}]} {
    %c0 = arith.constant 0 : index
    %c0_0 = arith.constant 0 : index
    %0 = vector.load %arg1[%c0, %c0_0] : memref<32x32xbf16, #tpu.memory_space<vmem>>, vector<32x32xbf16>
    %c0_1 = arith.constant 0 : index
    %c0_2 = arith.constant 0 : index
    %1 = vector.load %arg2[%c0_1, %c0_2] : memref<32x64xbf16, #tpu.memory_space<vmem>>, vector<32x64xbf16>
    %cst = arith.constant dense<0.000000e+00> : vector<32x64xf32>
    %2 = tpu.matmul %0, %1, %cst {dimension_numbers = #tpu.dot_dimension_numbers<[1], [0], [0], [1], [0, 0, 1, 1], [], []>} : vector<32x32xbf16>, vector<32x64xbf16>, vector<32x64xf32> -> vector<32x64xf32>
    %c0_3 = arith.constant 0 : index
    %c0_4 = arith.constant 0 : index
    %3 = vector.load %arg5[%c0_3, %c0_4] : memref<16x16xf32, #tpu.memory_space<vmem>>, vector<16x16xf32>
    %cst_5 = arith.constant 0.000000e+00 : f32
    %4 = vector.broadcast %cst_5 : f32 to vector<16x32xf32>
    %cst_6 = arith.constant 0.000000e+00 : f32
    %5 = vector.broadcast %cst_6 : f32 to vector<16x32xf32>
    %c0_7 = arith.constant 0 : index
    %c0_8 = arith.constant 0 : index
    %c0_9 = arith.constant 0 : index
    %6 = vector.load %arg3[%c0_7, %c0_8, %c0_9] : memref<4x32x32xbf16, #tpu.memory_space<vmem>>, vector<1x32x32xbf16>
    %7 = vector.shape_cast %6 : vector<1x32x32xbf16> to vector<32x32xbf16>
    %cst_10 = arith.constant dense<0.000000e+00> : vector<32x32xf32>
    %8 = tpu.matmul %0, %7, %cst_10 {dimension_numbers = #tpu.dot_dimension_numbers<[1], [0], [0], [1], [0, 0, 1, 1], [], []>} : vector<32x32xbf16>, vector<32x32xbf16>, vector<32x32xf32> -> vector<32x32xf32>
    %9 = vector.extract_strided_slice %2 {offsets = [0, 0], sizes = [16, 8], strides = [1, 1]} : vector<32x64xf32> to vector<16x8xf32>
    %10 = vector.extract_strided_slice %2 {offsets = [0, 32], sizes = [16, 8], strides = [1, 1]} : vector<32x64xf32> to vector<16x8xf32>
    %11 = tpu.transpose %10, [1, 0] : vector<16x8xf32> -> vector<8x16xf32>
    %cst_11 = arith.constant dense<0.000000e+00> : vector<16x16xf32>
    %12 = tpu.matmul %9, %11, %cst_11 {dimension_numbers = #tpu.dot_dimension_numbers<[1], [0], [0], [1], [0, 0, 1, 1], [], []>} : vector<16x8xf32>, vector<8x16xf32>, vector<16x16xf32> -> vector<16x16xf32>
    %cst_12 = arith.constant 0.353553385 : f32
    %13 = vector.broadcast %cst_12 : f32 to vector<16x16xf32>
    %14 = arith.mulf %12, %13 : vector<16x16xf32>
    %15 = arith.addf %14, %3 : vector<16x16xf32>
    %cst_13 = arith.constant dense<0xFF800000> : vector<16xf32>
    %16 = vector.multi_reduction <maximumf>, %15, %cst_13 [1] : vector<16x16xf32> to vector<16xf32>
    %17 = vector.shape_cast %16 : vector<16xf32> to vector<16x1xf32>
    %18 = vector.broadcast %17 : vector<16x1xf32> to vector<16x16xf32>
    %19 = arith.subf %15, %18 : vector<16x16xf32>
    %20 = math.exp %19 : vector<16x16xf32>
    %cst_14 = arith.constant dense<0.000000e+00> : vector<16xf32>
    %21 = vector.multi_reduction <add>, %20, %cst_14 [1] : vector<16x16xf32> to vector<16xf32>
    %22 = vector.shape_cast %21 : vector<16xf32> to vector<16x1xf32>
    %23 = vector.broadcast %22 : vector<16x1xf32> to vector<16x16xf32>
    %24 = arith.divf %20, %23 : vector<16x16xf32>
    %25 = vector.extract_strided_slice %8 {offsets = [0, 0], sizes = [16, 32], strides = [1, 1]} : vector<32x32xf32> to vector<16x32xf32>
    %cst_15 = arith.constant dense<0.000000e+00> : vector<16x32xf32>
    %26 = tpu.matmul %24, %25, %cst_15 {dimension_numbers = #tpu.dot_dimension_numbers<[1], [0], [0], [1], [0, 0, 1, 1], [], []>} : vector<16x16xf32>, vector<16x32xf32>, vector<16x32xf32> -> vector<16x32xf32>
    %27 = arith.addf %4, %26 : vector<16x32xf32>
    %28 = vector.extract_strided_slice %2 {offsets = [16, 0], sizes = [16, 8], strides = [1, 1]} : vector<32x64xf32> to vector<16x8xf32>
    %29 = vector.extract_strided_slice %2 {offsets = [16, 32], sizes = [16, 8], strides = [1, 1]} : vector<32x64xf32> to vector<16x8xf32>
    %30 = tpu.transpose %29, [1, 0] : vector<16x8xf32> -> vector<8x16xf32>
    %cst_16 = arith.constant dense<0.000000e+00> : vector<16x16xf32>
    %31 = tpu.matmul %28, %30, %cst_16 {dimension_numbers = #tpu.dot_dimension_numbers<[1], [0], [0], [1], [0, 0, 1, 1], [], []>} : vector<16x8xf32>, vector<8x16xf32>, vector<16x16xf32> -> vector<16x16xf32>
    %cst_17 = arith.constant 0.353553385 : f32
    %32 = vector.broadcast %cst_17 : f32 to vector<16x16xf32>
    %33 = arith.mulf %31, %32 : vector<16x16xf32>
    %34 = arith.addf %33, %3 : vector<16x16xf32>
    %cst_18 = arith.constant dense<0xFF800000> : vector<16xf32>
    %35 = vector.multi_reduction <maximumf>, %34, %cst_18 [1] : vector<16x16xf32> to vector<16xf32>
    %36 = vector.shape_cast %35 : vector<16xf32> to vector<16x1xf32>
    %37 = vector.broadcast %36 : vector<16x1xf32> to vector<16x16xf32>
    %38 = arith.subf %34, %37 : vector<16x16xf32>
    %39 = math.exp %38 : vector<16x16xf32>
    %cst_19 = arith.constant dense<0.000000e+00> : vector<16xf32>
    %40 = vector.multi_reduction <add>, %39, %cst_19 [1] : vector<16x16xf32> to vector<16xf32>
    %41 = vector.shape_cast %40 : vector<16xf32> to vector<16x1xf32>
    %42 = vector.broadcast %41 : vector<16x1xf32> to vector<16x16xf32>
    %43 = arith.divf %39, %42 : vector<16x16xf32>
    %44 = vector.extract_strided_slice %8 {offsets = [16, 0], sizes = [16, 32], strides = [1, 1]} : vector<32x32xf32> to vector<16x32xf32>
    %cst_20 = arith.constant dense<0.000000e+00> : vector<16x32xf32>
    %45 = tpu.matmul %43, %44, %cst_20 {dimension_numbers = #tpu.dot_dimension_numbers<[1], [0], [0], [1], [0, 0, 1, 1], [], []>} : vector<16x16xf32>, vector<16x32xf32>, vector<16x32xf32> -> vector<16x32xf32>
    %46 = arith.addf %5, %45 : vector<16x32xf32>
    %c1 = arith.constant 1 : index
    %c0_21 = arith.constant 0 : index
    %c0_22 = arith.constant 0 : index
    %47 = vector.load %arg3[%c1, %c0_21, %c0_22] : memref<4x32x32xbf16, #tpu.memory_space<vmem>>, vector<1x32x32xbf16>
    %48 = vector.shape_cast %47 : vector<1x32x32xbf16> to vector<32x32xbf16>
    %cst_23 = arith.constant dense<0.000000e+00> : vector<32x32xf32>
    %49 = tpu.matmul %0, %48, %cst_23 {dimension_numbers = #tpu.dot_dimension_numbers<[1], [0], [0], [1], [0, 0, 1, 1], [], []>} : vector<32x32xbf16>, vector<32x32xbf16>, vector<32x32xf32> -> vector<32x32xf32>
    %50 = vector.extract_strided_slice %2 {offsets = [0, 8], sizes = [16, 8], strides = [1, 1]} : vector<32x64xf32> to vector<16x8xf32>
    %51 = vector.extract_strided_slice %2 {offsets = [0, 40], sizes = [16, 8], strides = [1, 1]} : vector<32x64xf32> to vector<16x8xf32>
    %52 = tpu.transpose %51, [1, 0] : vector<16x8xf32> -> vector<8x16xf32>
    %cst_24 = arith.constant dense<0.000000e+00> : vector<16x16xf32>
    %53 = tpu.matmul %50, %52, %cst_24 {dimension_numbers = #tpu.dot_dimension_numbers<[1], [0], [0], [1], [0, 0, 1, 1], [], []>} : vector<16x8xf32>, vector<8x16xf32>, vector<16x16xf32> -> vector<16x16xf32>
    %cst_25 = arith.constant 0.353553385 : f32
    %54 = vector.broadcast %cst_25 : f32 to vector<16x16xf32>
    %55 = arith.mulf %53, %54 : vector<16x16xf32>
    %56 = arith.addf %55, %3 : vector<16x16xf32>
    %cst_26 = arith.constant dense<0xFF800000> : vector<16xf32>
    %57 = vector.multi_reduction <maximumf>, %56, %cst_26 [1] : vector<16x16xf32> to vector<16xf32>
    %58 = vector.shape_cast %57 : vector<16xf32> to vector<16x1xf32>
    %59 = vector.broadcast %58 : vector<16x1xf32> to vector<16x16xf32>
    %60 = arith.subf %56, %59 : vector<16x16xf32>
    %61 = math.exp %60 : vector<16x16xf32>
    %cst_27 = arith.constant dense<0.000000e+00> : vector<16xf32>
    %62 = vector.multi_reduction <add>, %61, %cst_27 [1] : vector<16x16xf32> to vector<16xf32>
    %63 = vector.shape_cast %62 : vector<16xf32> to vector<16x1xf32>
    %64 = vector.broadcast %63 : vector<16x1xf32> to vector<16x16xf32>
    %65 = arith.divf %61, %64 : vector<16x16xf32>
    %66 = vector.extract_strided_slice %49 {offsets = [0, 0], sizes = [16, 32], strides = [1, 1]} : vector<32x32xf32> to vector<16x32xf32>
    %cst_28 = arith.constant dense<0.000000e+00> : vector<16x32xf32>
    %67 = tpu.matmul %65, %66, %cst_28 {dimension_numbers = #tpu.dot_dimension_numbers<[1], [0], [0], [1], [0, 0, 1, 1], [], []>} : vector<16x16xf32>, vector<16x32xf32>, vector<16x32xf32> -> vector<16x32xf32>
    %68 = arith.addf %27, %67 : vector<16x32xf32>
    %69 = vector.extract_strided_slice %2 {offsets = [16, 8], sizes = [16, 8], strides = [1, 1]} : vector<32x64xf32> to vector<16x8xf32>
    %70 = vector.extract_strided_slice %2 {offsets = [16, 40], sizes = [16, 8], strides = [1, 1]} : vector<32x64xf32> to vector<16x8xf32>
    %71 = tpu.transpose %70, [1, 0] : vector<16x8xf32> -> vector<8x16xf32>
    %cst_29 = arith.constant dense<0.000000e+00> : vector<16x16xf32>
    %72 = tpu.matmul %69, %71, %cst_29 {dimension_numbers = #tpu.dot_dimension_numbers<[1], [0], [0], [1], [0, 0, 1, 1], [], []>} : vector<16x8xf32>, vector<8x16xf32>, vector<16x16xf32> -> vector<16x16xf32>
    %cst_30 = arith.constant 0.353553385 : f32
    %73 = vector.broadcast %cst_30 : f32 to vector<16x16xf32>
    %74 = arith.mulf %72, %73 : vector<16x16xf32>
    %75 = arith.addf %74, %3 : vector<16x16xf32>
    %cst_31 = arith.constant dense<0xFF800000> : vector<16xf32>
    %76 = vector.multi_reduction <maximumf>, %75, %cst_31 [1] : vector<16x16xf32> to vector<16xf32>
    %77 = vector.shape_cast %76 : vector<16xf32> to vector<16x1xf32>
    %78 = vector.broadcast %77 : vector<16x1xf32> to vector<16x16xf32>
    %79 = arith.subf %75, %78 : vector<16x16xf32>
    %80 = math.exp %79 : vector<16x16xf32>
    %cst_32 = arith.constant dense<0.000000e+00> : vector<16xf32>
    %81 = vector.multi_reduction <add>, %80, %cst_32 [1] : vector<16x16xf32> to vector<16xf32>
    %82 = vector.shape_cast %81 : vector<16xf32> to vector<16x1xf32>
    %83 = vector.broadcast %82 : vector<16x1xf32> to vector<16x16xf32>
    %84 = arith.divf %80, %83 : vector<16x16xf32>
    %85 = vector.extract_strided_slice %49 {offsets = [16, 0], sizes = [16, 32], strides = [1, 1]} : vector<32x32xf32> to vector<16x32xf32>
    %cst_33 = arith.constant dense<0.000000e+00> : vector<16x32xf32>
    %86 = tpu.matmul %84, %85, %cst_33 {dimension_numbers = #tpu.dot_dimension_numbers<[1], [0], [0], [1], [0, 0, 1, 1], [], []>} : vector<16x16xf32>, vector<16x32xf32>, vector<16x32xf32> -> vector<16x32xf32>
    %87 = arith.addf %46, %86 : vector<16x32xf32>
    %c2 = arith.constant 2 : index
    %c0_34 = arith.constant 0 : index
    %c0_35 = arith.constant 0 : index
    %88 = vector.load %arg3[%c2, %c0_34, %c0_35] : memref<4x32x32xbf16, #tpu.memory_space<vmem>>, vector<1x32x32xbf16>
    %89 = vector.shape_cast %88 : vector<1x32x32xbf16> to vector<32x32xbf16>
    %cst_36 = arith.constant dense<0.000000e+00> : vector<32x32xf32>
    %90 = tpu.matmul %0, %89, %cst_36 {dimension_numbers = #tpu.dot_dimension_numbers<[1], [0], [0], [1], [0, 0, 1, 1], [], []>} : vector<32x32xbf16>, vector<32x32xbf16>, vector<32x32xf32> -> vector<32x32xf32>
    %91 = vector.extract_strided_slice %2 {offsets = [0, 16], sizes = [16, 8], strides = [1, 1]} : vector<32x64xf32> to vector<16x8xf32>
    %92 = vector.extract_strided_slice %2 {offsets = [0, 48], sizes = [16, 8], strides = [1, 1]} : vector<32x64xf32> to vector<16x8xf32>
    %93 = tpu.transpose %92, [1, 0] : vector<16x8xf32> -> vector<8x16xf32>
    %cst_37 = arith.constant dense<0.000000e+00> : vector<16x16xf32>
    %94 = tpu.matmul %91, %93, %cst_37 {dimension_numbers = #tpu.dot_dimension_numbers<[1], [0], [0], [1], [0, 0, 1, 1], [], []>} : vector<16x8xf32>, vector<8x16xf32>, vector<16x16xf32> -> vector<16x16xf32>
    %cst_38 = arith.constant 0.353553385 : f32
    %95 = vector.broadcast %cst_38 : f32 to vector<16x16xf32>
    %96 = arith.mulf %94, %95 : vector<16x16xf32>
    %97 = arith.addf %96, %3 : vector<16x16xf32>
    %cst_39 = arith.constant dense<0xFF800000> : vector<16xf32>
    %98 = vector.multi_reduction <maximumf>, %97, %cst_39 [1] : vector<16x16xf32> to vector<16xf32>
    %99 = vector.shape_cast %98 : vector<16xf32> to vector<16x1xf32>
    %100 = vector.broadcast %99 : vector<16x1xf32> to vector<16x16xf32>
    %101 = arith.subf %97, %100 : vector<16x16xf32>
    %102 = math.exp %101 : vector<16x16xf32>
    %cst_40 = arith.constant dense<0.000000e+00> : vector<16xf32>
    %103 = vector.multi_reduction <add>, %102, %cst_40 [1] : vector<16x16xf32> to vector<16xf32>
    %104 = vector.shape_cast %103 : vector<16xf32> to vector<16x1xf32>
    %105 = vector.broadcast %104 : vector<16x1xf32> to vector<16x16xf32>
    %106 = arith.divf %102, %105 : vector<16x16xf32>
    %107 = vector.extract_strided_slice %90 {offsets = [0, 0], sizes = [16, 32], strides = [1, 1]} : vector<32x32xf32> to vector<16x32xf32>
    %cst_41 = arith.constant dense<0.000000e+00> : vector<16x32xf32>
    %108 = tpu.matmul %106, %107, %cst_41 {dimension_numbers = #tpu.dot_dimension_numbers<[1], [0], [0], [1], [0, 0, 1, 1], [], []>} : vector<16x16xf32>, vector<16x32xf32>, vector<16x32xf32> -> vector<16x32xf32>
    %109 = arith.addf %68, %108 : vector<16x32xf32>
    %110 = vector.extract_strided_slice %2 {offsets = [16, 16], sizes = [16, 8], strides = [1, 1]} : vector<32x64xf32> to vector<16x8xf32>
    %111 = vector.extract_strided_slice %2 {offsets = [16, 48], sizes = [16, 8], strides = [1, 1]} : vector<32x64xf32> to vector<16x8xf32>
    %112 = tpu.transpose %111, [1, 0] : vector<16x8xf32> -> vector<8x16xf32>
    %cst_42 = arith.constant dense<0.000000e+00> : vector<16x16xf32>
    %113 = tpu.matmul %110, %112, %cst_42 {dimension_numbers = #tpu.dot_dimension_numbers<[1], [0], [0], [1], [0, 0, 1, 1], [], []>} : vector<16x8xf32>, vector<8x16xf32>, vector<16x16xf32> -> vector<16x16xf32>
    %cst_43 = arith.constant 0.353553385 : f32
    %114 = vector.broadcast %cst_43 : f32 to vector<16x16xf32>
    %115 = arith.mulf %113, %114 : vector<16x16xf32>
    %116 = arith.addf %115, %3 : vector<16x16xf32>
    %cst_44 = arith.constant dense<0xFF800000> : vector<16xf32>
    %117 = vector.multi_reduction <maximumf>, %116, %cst_44 [1] : vector<16x16xf32> to vector<16xf32>
    %118 = vector.shape_cast %117 : vector<16xf32> to vector<16x1xf32>
    %119 = vector.broadcast %118 : vector<16x1xf32> to vector<16x16xf32>
    %120 = arith.subf %116, %119 : vector<16x16xf32>
    %121 = math.exp %120 : vector<16x16xf32>
    %cst_45 = arith.constant dense<0.000000e+00> : vector<16xf32>
    %122 = vector.multi_reduction <add>, %121, %cst_45 [1] : vector<16x16xf32> to vector<16xf32>
    %123 = vector.shape_cast %122 : vector<16xf32> to vector<16x1xf32>
    %124 = vector.broadcast %123 : vector<16x1xf32> to vector<16x16xf32>
    %125 = arith.divf %121, %124 : vector<16x16xf32>
    %126 = vector.extract_strided_slice %90 {offsets = [16, 0], sizes = [16, 32], strides = [1, 1]} : vector<32x32xf32> to vector<16x32xf32>
    %cst_46 = arith.constant dense<0.000000e+00> : vector<16x32xf32>
    %127 = tpu.matmul %125, %126, %cst_46 {dimension_numbers = #tpu.dot_dimension_numbers<[1], [0], [0], [1], [0, 0, 1, 1], [], []>} : vector<16x16xf32>, vector<16x32xf32>, vector<16x32xf32> -> vector<16x32xf32>
    %128 = arith.addf %87, %127 : vector<16x32xf32>
    %c3 = arith.constant 3 : index
    %c0_47 = arith.constant 0 : index
    %c0_48 = arith.constant 0 : index
    %129 = vector.load %arg3[%c3, %c0_47, %c0_48] : memref<4x32x32xbf16, #tpu.memory_space<vmem>>, vector<1x32x32xbf16>
    %130 = vector.shape_cast %129 : vector<1x32x32xbf16> to vector<32x32xbf16>
    %cst_49 = arith.constant dense<0.000000e+00> : vector<32x32xf32>
    %131 = tpu.matmul %0, %130, %cst_49 {dimension_numbers = #tpu.dot_dimension_numbers<[1], [0], [0], [1], [0, 0, 1, 1], [], []>} : vector<32x32xbf16>, vector<32x32xbf16>, vector<32x32xf32> -> vector<32x32xf32>
    %132 = vector.extract_strided_slice %2 {offsets = [0, 24], sizes = [16, 8], strides = [1, 1]} : vector<32x64xf32> to vector<16x8xf32>
    %133 = vector.extract_strided_slice %2 {offsets = [0, 56], sizes = [16, 8], strides = [1, 1]} : vector<32x64xf32> to vector<16x8xf32>
    %134 = tpu.transpose %133, [1, 0] : vector<16x8xf32> -> vector<8x16xf32>
    %cst_50 = arith.constant dense<0.000000e+00> : vector<16x16xf32>
    %135 = tpu.matmul %132, %134, %cst_50 {dimension_numbers = #tpu.dot_dimension_numbers<[1], [0], [0], [1], [0, 0, 1, 1], [], []>} : vector<16x8xf32>, vector<8x16xf32>, vector<16x16xf32> -> vector<16x16xf32>
    %cst_51 = arith.constant 0.353553385 : f32
    %136 = vector.broadcast %cst_51 : f32 to vector<16x16xf32>
    %137 = arith.mulf %135, %136 : vector<16x16xf32>
    %138 = arith.addf %137, %3 : vector<16x16xf32>
    %cst_52 = arith.constant dense<0xFF800000> : vector<16xf32>
    %139 = vector.multi_reduction <maximumf>, %138, %cst_52 [1] : vector<16x16xf32> to vector<16xf32>
    %140 = vector.shape_cast %139 : vector<16xf32> to vector<16x1xf32>
    %141 = vector.broadcast %140 : vector<16x1xf32> to vector<16x16xf32>
    %142 = arith.subf %138, %141 : vector<16x16xf32>
    %143 = math.exp %142 : vector<16x16xf32>
    %cst_53 = arith.constant dense<0.000000e+00> : vector<16xf32>
    %144 = vector.multi_reduction <add>, %143, %cst_53 [1] : vector<16x16xf32> to vector<16xf32>
    %145 = vector.shape_cast %144 : vector<16xf32> to vector<16x1xf32>
    %146 = vector.broadcast %145 : vector<16x1xf32> to vector<16x16xf32>
    %147 = arith.divf %143, %146 : vector<16x16xf32>
    %148 = vector.extract_strided_slice %131 {offsets = [0, 0], sizes = [16, 32], strides = [1, 1]} : vector<32x32xf32> to vector<16x32xf32>
    %cst_54 = arith.constant dense<0.000000e+00> : vector<16x32xf32>
    %149 = tpu.matmul %147, %148, %cst_54 {dimension_numbers = #tpu.dot_dimension_numbers<[1], [0], [0], [1], [0, 0, 1, 1], [], []>} : vector<16x16xf32>, vector<16x32xf32>, vector<16x32xf32> -> vector<16x32xf32>
    %150 = arith.addf %109, %149 : vector<16x32xf32>
    %151 = vector.extract_strided_slice %2 {offsets = [16, 24], sizes = [16, 8], strides = [1, 1]} : vector<32x64xf32> to vector<16x8xf32>
    %152 = vector.extract_strided_slice %2 {offsets = [16, 56], sizes = [16, 8], strides = [1, 1]} : vector<32x64xf32> to vector<16x8xf32>
    %153 = tpu.transpose %152, [1, 0] : vector<16x8xf32> -> vector<8x16xf32>
    %cst_55 = arith.constant dense<0.000000e+00> : vector<16x16xf32>
    %154 = tpu.matmul %151, %153, %cst_55 {dimension_numbers = #tpu.dot_dimension_numbers<[1], [0], [0], [1], [0, 0, 1, 1], [], []>} : vector<16x8xf32>, vector<8x16xf32>, vector<16x16xf32> -> vector<16x16xf32>
    %cst_56 = arith.constant 0.353553385 : f32
    %155 = vector.broadcast %cst_56 : f32 to vector<16x16xf32>
    %156 = arith.mulf %154, %155 : vector<16x16xf32>
    %157 = arith.addf %156, %3 : vector<16x16xf32>
    %cst_57 = arith.constant dense<0xFF800000> : vector<16xf32>
    %158 = vector.multi_reduction <maximumf>, %157, %cst_57 [1] : vector<16x16xf32> to vector<16xf32>
    %159 = vector.shape_cast %158 : vector<16xf32> to vector<16x1xf32>
    %160 = vector.broadcast %159 : vector<16x1xf32> to vector<16x16xf32>
    %161 = arith.subf %157, %160 : vector<16x16xf32>
    %162 = math.exp %161 : vector<16x16xf32>
    %cst_58 = arith.constant dense<0.000000e+00> : vector<16xf32>
    %163 = vector.multi_reduction <add>, %162, %cst_58 [1] : vector<16x16xf32> to vector<16xf32>
    %164 = vector.shape_cast %163 : vector<16xf32> to vector<16x1xf32>
    %165 = vector.broadcast %164 : vector<16x1xf32> to vector<16x16xf32>
    %166 = arith.divf %162, %165 : vector<16x16xf32>
    %167 = vector.extract_strided_slice %131 {offsets = [16, 0], sizes = [16, 32], strides = [1, 1]} : vector<32x32xf32> to vector<16x32xf32>
    %cst_59 = arith.constant dense<0.000000e+00> : vector<16x32xf32>
    %168 = tpu.matmul %166, %167, %cst_59 {dimension_numbers = #tpu.dot_dimension_numbers<[1], [0], [0], [1], [0, 0, 1, 1], [], []>} : vector<16x16xf32>, vector<16x32xf32>, vector<16x32xf32> -> vector<16x32xf32>
    %169 = arith.addf %128, %168 : vector<16x32xf32>
    %170 = tpu.concatenate %150, %169 in 0 : vector<16x32xf32>, vector<16x32xf32> -> vector<32x32xf32>
    %c0_60 = arith.constant 0 : index
    %c0_61 = arith.constant 0 : index
    %171 = vector.load %arg4[%c0_60, %c0_61] : memref<1x32xf32, #tpu.memory_space<vmem>>, vector<1x32xf32>
    %172 = vector.broadcast %171 : vector<1x32xf32> to vector<32x32xf32>
    %173 = arith.addf %170, %172 : vector<32x32xf32>
    %c0_62 = arith.constant 0 : index
    %c0_63 = arith.constant 0 : index
    %174 = vector.load %arg6[%c0_62, %c0_63] : memref<32x32xf32, #tpu.memory_space<vmem>>, vector<32x32xf32>
    tpu.vector_store %arg6[%c0_62, %c0_63], %173 {strides = array<i32>} : memref<32x32xf32, #tpu.memory_space<vmem>>, vector<32x32xf32>,
    return
  }
  func.func @transform_0(%arg0: i32) -> (i32, i32) {
    %c0_i32 = arith.constant 0 : i32
    %c0_i32_0 = arith.constant 0 : i32
    %c0_i32_1 = arith.constant 0 : i32
    return %c0_i32, %c0_i32_0 : i32, i32
  }
  func.func @transform_1(%arg0: i32) -> (i32, i32) {
    %c0_i32 = arith.constant 0 : i32
    %c0_i32_0 = arith.constant 0 : i32
    %c0_i32_1 = arith.constant 0 : i32
    return %c0_i32, %c0_i32_0 : i32, i32
  }
  func.func @transform_2(%arg0: i32) -> (i32, i32, i32) {
    %c0_i32 = arith.constant 0 : i32
    %c0_i32_0 = arith.constant 0 : i32
    %c0_i32_1 = arith.constant 0 : i32
    %c0_i32_2 = arith.constant 0 : i32
    return %c0_i32, %c0_i32_0, %c0_i32_1 : i32, i32, i32
  }
  func.func @transform_3(%arg0: i32) -> (i32, i32) {
    %c0_i32 = arith.constant 0 : i32
    %c0_i32_0 = arith.constant 0 : i32
    %c0_i32_1 = arith.constant 0 : i32
    return %c0_i32, %c0_i32_0 : i32, i32
  }
  func.func @transform_4(%arg0: i32) -> (i32, i32) {
    %c0_i32 = arith.constant 0 : i32
    %c0_i32_0 = arith.constant 0 : i32
    %c0_i32_1 = arith.constant 0 : i32
    return %c0_i32, %c0_i32_0 : i32, i32
  }
  func.func @transform_5(%arg0: i32) -> (i32, i32) {
    %c0_i32 = arith.constant 0 : i32
    %c0_i32_0 = arith.constant 0 : i32
    %c0_i32_1 = arith.constant 0 : i32
    return %c0_i32, %c0_i32_0 : i32, i32
  }
}

</mosaic_0001>

<bundles_post_ra>
// kernel: tpu_custom_call.1
= control target key start
LH: loop header
LB: loop body
LE: loop exit
PB: predicated region body
PF: predicated region fallthrough
CT: control target
= control target key end

     0   :  { %10 = vsyncpa [#allocation3], 0  ;;  %s2012_s0 = inlined_call_operand.hbm [shape: bf16[32,32], index: 0, kind: input, shape index: {}]   ;;  %s2013_s1 = inlined_call_operand.hbm [shape: bf16[32,64], index: 1, kind: input, shape index: {}]   ;;  %s2014_s2 = inlined_call_operand.hbm [shape: bf16[4,32,32], index: 2, kind: input, shape index: {}]   ;;  %s2015_s3 = inlined_call_operand.vmem [shape: f32[1,32], index: 3, kind: input, shape index: {}]   ;;  %s2016_s4 = inlined_call_operand.hbm [shape: f32[16,16], index: 4, kind: input, shape index: {}]   ;;  %s2017_s5 = inlined_call_operand.hbm [shape: f32[32,32], index: 5, kind: output, shape index: {}]  }
   0x1   :  { %11 = vsyncpa [#allocation6], 0 }
   0x2   :  { %12 = vsyncpa [#allocation9], 0 }
   0x3   :  { %13 = vsyncpa [#allocation4], 0  ;;  %s31_s20 = sshll.u32 %s2013_s1, 4  ;;  %s1618_s21 = smov [#allocation5]   ;;  %s32_s20 = int_to_ptr.hbm [resolvable:$true] %s31_s20 }
   0x4   :  { %s33_s22 = sshll.u32 %s1618_s21, 4  ;;  %s18_s25 = sshll.u32 %s2012_s0, 4  ;;  %s34_s22 = int_to_ptr.vmem [resolvable:$true] %s33_s22  ;;  %s19_s25 = int_to_ptr.hbm [resolvable:$true] %s18_s25 }
   0x5   :  { %s1619_s26 = smov 64   ;;  %s1620_s27 = smov 4  }
   0x6   :  { %39 = dma.hbm_to_vmem [thread:$0]  %s32_s20, 256, %s34_s22, [#allocation6], %s1619_s26, %s1619_s26, %s1620_s27  }
   0x7   :  { %s1621_s28 = smov [#allocation2]   ;;  %s44_s7 = sshll.u32 %s2014_s2, 4  ;;  %s45_s7 = int_to_ptr.hbm [resolvable:$true] %s44_s7 }
   0x8   :  { %s20_s29 = sshll.u32 %s1621_s28, 4  ;;  %s59_s9 = sshll.u32 %s2016_s4, 4  ;;  %s21_s29 = int_to_ptr.vmem [resolvable:$true] %s20_s29  ;;  %s60_s9 = int_to_ptr.hbm [resolvable:$true] %s59_s9 }
   0x9   :  { %26 = dma.hbm_to_vmem [thread:$0]  %s19_s25, 256, %s21_s29, [#allocation3], %s1619_s26, %s1619_s26, %s1620_s27  }
   0xa   :  { %s1622_s10 = smov [#allocation7]   ;;  %s1623_s0 = smov [#allocation8]  }
   0xb   :  { %s46_s11 = sshll.u32 %s1622_s10, 4  ;;  %s61_s12 = sshll.u32 %s1623_s0, 4  ;;  %s47_s11 = int_to_ptr.vmem [resolvable:$true] %s46_s11  ;;  %s62_s12 = int_to_ptr.vmem [resolvable:$true] %s61_s12 }
   0xc   :  { %52 = dma.hbm_to_vmem [thread:$0]  %s45_s7, 1024, %s47_s11, [#allocation6], %s1619_s26, %s1619_s26, %s1620_s27  }
   0xd   :  { %s1624_s13 = smov 128   ;;  %s1625_s14 = smov 8  }
   0xe   :  { %67 = dma.hbm_to_vmem [thread:$0]  %s60_s9, 256, %s62_s12, [#allocation9], %s1624_s13, %s1624_s13, %s1625_s14  }
   0xf   :  { %1610 = dma.done.wait [#allocation3], 256  }
  0x10   :  { %1611 = vsyncadd [#allocation3], 4294967040 }
  0x11   :  { %1612 = dma.done.wait [#allocation6], 1280  }
  0x12   :  { %1613 = vsyncadd [#allocation6], 4294966016 }
  0x13   :  { %1614 = dma.done.wait [#allocation9], 256  }
  0x14   :  { %1615 = vsyncadd [#allocation9], 4294967040  ;;  %v1394_v0 = vld [vmem:[#allocation5 + $0x8] sm:$0xff]  ;;  %v1393_v1 = vld [vmem:[#allocation5] sm:$0xff]  ;;  %vm115_vm0 = vcmask 261120   ;;  %s1626_s2 = smov 88  }
  0x15   :  { %128 = vmatpush.bf16.msra.mxu0 %v1394_v0  ;;  %v1679_v2 = vld [vmem:[#allocation2] sm:$0xff]  ;;  %v1683_v3 = vld [vmem:[#allocation2 + $0x8] sm:$0xff]  ;;  %s1627_s4 = smov 96   ;;  %s1628_s15 = smov 120   ;;  %vm184_vm1 = vcmask 64512   ;;  %vm220_vm2 = vcmask 130048  }
  0x16   :  { %v1723_v17 = vld [vmem:[#allocation8] sm:$0xff]  ;;  %v1729_v28 = vld [vmem:[#allocation8 + $0x8] sm:$0xff]  ;;  %s1629_s16 = smov 112   ;;  %s1630_s17 = smov 80  }
  0x17   :  { %v1396_v32 = vld [vmem:[#allocation7 + $0x8] sm:$0xff]  ;;  %v1395_v34 = vld [vmem:[#allocation7] sm:$0xff]  ;;  %s1631_s18 = smov 72   ;;  %s1632_s19 = smov 104  }
  0x18   :  { %165 = vmatpush.bf16.msra.mxu1 %v1396_v32  ;;  %s1270_s25 = sshll.u32 %s2017_s5, 4  ;;  %s1271_s25 = int_to_ptr.hbm [resolvable:$true] %s1270_s25 }
  0x19   :  { %129 = vmatpush.bf16.msra.mxu0 %v1393_v1 }
  0x1c   :  { %1301 = vmatmul.msk.bf16.vlgmr.msra.gmra.mxu0 %vm115_vm0, %v1679_v2  ;;  %166 = vmatpush.bf16.msra.mxu1 %v1395_v34 }
  0x1f   :  { %1311 = vmatmul.msk.bf16.vlgmr.msra.gmra.mxu1 %vm115_vm0, %v1679_v2 }
  0x2c   :  { %1302 = vmatmul.msk.bf16.gmra.mxu0 %vm115_vm0, %v1683_v3 }
  0x2f   :  { %1312 = vmatmul.msk.bf16.gmra.mxu1 %vm115_vm0, %v1683_v3 }
  0x99   :  { %v1687_v4 = vpop.f32.mrf.mxu0 }
  0x9c   :  { %v168_v56 = vpop.f32.mrf.mxu1 }
  0xa1   :  { %v1689_v5 = vpop.f32.mrf.mxu0 }
  0xa2   :  { %400 = vrot.lane.b32.xlu2 %v1689_v5, %s1626_s2  ;;  %182 = vrot.lane.b32.xlu0 %v1689_v5, %s1627_s4 }
  0xa4   :  { %v170_v57 = vpop.f32.mrf.mxu1 }
  0xa5   :  { %534 = vmatpush.msrb.mxu1 %v170_v57 }
  0xa7   :  { %535 = vmatpush.msrb.mxu1 %v168_v56 }
  0xa9   :  { %v1694_v6 = vpop.f32.mrf.mxu0 }
  0xaa   :  { %398 = vrot.lane.b32.xlu2 %v1687_v4, %s1626_s2  ;;  %180 = vrot.lane.b32.xlu0 %v1687_v4, %s1627_s4 }
  0xac   :  { %v173_v63 = vpop.f32.mrf.mxu1 }
  0xb1   :  { %v1699_v7 = vpop.f32.mrf.mxu0 }
  0xb2   :  { %394 = vrot.lane.b32.xlu0 %v1687_v4, %s1628_s15  ;;  %273 = vrot.lane.b32.xlu1 %v1699_v7, %s1627_s4 }
  0xb4   :  { %v175_v0 = vpop.f32.mrf.mxu1 }
  0xb5   :  { %683 = vmatpush.msra.mxu1 %v175_v0 }
  0xb7   :  { %684 = vmatpush.msra.mxu1 %v173_v63 }
  0xba   :  { %271 = vrot.lane.b32.xlu1 %v1694_v6, %s1627_s4 }
  0xc2   :  { %396 = vrot.lane.b32.xlu1 %v1689_v5, %s1628_s15 }
  0xfc   :  { %v401_v11 = vpop.permute.xlu2 %400 }
 0x104   :  { %v399_v13 = vpop.permute.xlu2 %398 }
 0x114   :  { %v183_v8 = vpop.permute.xlu0 %182 }
 0x115   :  { %1313 = vmatpush.xpose.msk.msra.mxu2 %vm184_vm1, %v183_v8 }
 0x11c   :  { %v181_v9 = vpop.permute.xlu0 %180 }
 0x11d   :  { %1314 = vmatpush.xpose.msk.msra.mxu2 %vm184_vm1, %v181_v9 }
 0x120   :  { %1315 = vmatmul.msk.f32.vlgmr.msra.gmra.mxu2 %vm184_vm1, %v1687_v4 }
 0x124   :  { %v274_v10 = vpop.permute.xlu1 %273  ;;  %v395_v14 = vpop.permute.xlu0 %394 }
 0x125   :  { %1317 = vmatpush.xpose.msk.msra.mxu3 %vm184_vm1, %v274_v10 }
 0x128   :  { %1316 = vmatmul.msk.f32.gmra.mxu2 %vm184_vm1, %v1689_v5 }
 0x12c   :  { %v272_v12 = vpop.permute.xlu1 %271 }
 0x12d   :  { %1318 = vmatpush.xpose.msk.msra.mxu3 %vm184_vm1, %v272_v12 }
 0x130   :  { %1319 = vmatmul.msk.f32.vlgmr.msra.gmra.mxu3 %vm184_vm1, %v1694_v6 }
 0x131   :  { %1331 = vmatpush.xpose.msk.msrb.mxu3 %vm184_vm1, %v401_v11 }
 0x134   :  { %v397_v15 = vpop.permute.xlu1 %396 }
 0x135   :  { %1332 = vmatpush.xpose.msk.msrb.mxu3 %vm184_vm1, %v399_v13 }
 0x138   :  { %1320 = vmatmul.msk.f32.gmra.mxu3 %vm184_vm1, %v1699_v7 }
 0x139   :  { %1405 = vmatpush.msra.mxu3 %v170_v57 }
 0x13b   :  { %1406 = vmatpush.msra.mxu3 %v168_v56 }
 0x140   :  { %1333 = vmatmul.msk.f32.vlgmr.msrb.gmra.mxu3 %vm184_vm1, %v395_v14 }
 0x148   :  { %1334 = vmatmul.msk.f32.gmra.mxu3 %vm184_vm1, %v397_v15 }
 0x1a3   :  { %v210_v16 = vpop.f32.mrf.mxu2 }
 0x1a4   :  { %v216_v18 = vmul.f32 0.35355338, %v210_v16 }
 0x1a6   :  { %v218_v19 = vadd.f32 %v216_v18, %v1723_v17 }
 0x1a8   :  { %v221_v20 = vsel %vm220_vm2, %v218_v19, -inf }
 0x1a9   :  { %222 = vmax.xlane.f32.xlu2 %v221_v20 }
 0x1ab   :  { %v213_v27 = vpop.f32.mrf.mxu2 }
 0x1ac   :  { %v217_v30 = vmul.f32 0.35355338, %v213_v27 }
 0x1ae   :  { %v219_v33 = vadd.f32 %v217_v30, %v1729_v28 }
 0x1b0   :  { %v224_v35 = vsel %vm220_vm2, %v219_v33, -inf }
 0x1b3   :  { %v300_v21 = vpop.f32.mrf.mxu3 }
 0x1b4   :  { %v306_v22 = vmul.f32 0.35355338, %v300_v21 }
 0x1b6   :  { %v308_v23 = vadd.f32 %v306_v22, %v1723_v17 }
 0x1b8   :  { %v310_v24 = vsel %vm220_vm2, %v308_v23, -inf }
 0x1b9   :  { %311 = vmax.xlane.f32.xlu0 %v310_v24 }
 0x1bb   :  { %v303_v25 = vpop.f32.mrf.mxu3 }
 0x1bc   :  { %v307_v26 = vmul.f32 0.35355338, %v303_v25 }
 0x1be   :  { %v309_v29 = vadd.f32 %v307_v26, %v1729_v28 }
 0x1c0   :  { %v313_v31 = vsel %vm220_vm2, %v309_v29, -inf }
 0x1c1   :  { %314 = vmax.xlane.f32.xlu1 %v313_v31 }
 0x1c3   :  { %v1765_v58 = vpop.f32.mrf.mxu3 }
 0x1c9   :  { %225 = vmax.xlane.f32.xlu1 %v224_v35 }
 0x1cb   :  { %v430_v59 = vpop.f32.mrf.mxu3 }
 0x1cc   :  { %v434_v60 = vmul.f32 0.35355338, %v430_v59 }
 0x1ce   :  { %v1769_v61 = vadd.f32 %v434_v60, %v1729_v28 }
 0x1d0   :  { %v440_v62 = vsel %vm220_vm2, %v1769_v61, -inf }
 0x1e2   :  { %850 = vrot.lane.b32.xlu1 %v1694_v6, %s1629_s16 }
 0x21c   :  { %v223_v36 = vpop.xlane.xlu2 %222 }
 0x21d   :  { %v227_v37 = vsub.f32 %v218_v19, %v223_v36 }
 0x21f   :  { %v229_v38 = vmul.f32 1.442695, %v227_v37  ;;  %v1398_v37 = vld [vmem:[#allocation7 + $0x18] sm:$0xff] }
 0x220   :  { %381 = vmatpush.bf16.msrb.mxu2 %v1398_v37 }
 0x221   :  { %1424 = vpow2.f32 %v229_v38 }
 0x227   :  { %v1741_v39 = vpop.eup %1424 }
 0x228   :  { %v233_v40 = vsel %vm220_vm2, %v1741_v39, 0.0 }
 0x229   :  { %234 = vadd.xlane.f32.xlu2 %v233_v40 }
 0x22c   :  { %v312_v41 = vpop.xlane.xlu0 %311 }
 0x22d   :  { %v316_v42 = vsub.f32 %v308_v23, %v312_v41 }
 0x22f   :  { %v318_v43 = vmul.f32 1.442695, %v316_v42 }
 0x231   :  { %1426 = vpow2.f32 %v318_v43 }
 0x234   :  { %v315_v44 = vpop.xlane.xlu1 %314 }
 0x235   :  { %v317_v45 = vsub.f32 %v309_v29, %v315_v44 }
 0x237   :  { %v1745_v46 = vpop.eup %1426  ;;  %v320_v47 = vmul.f32 1.442695, %v317_v45 }
 0x238   :  { %v322_v48 = vsel %vm220_vm2, %v1745_v46, 0.0 }
 0x239   :  { %1428 = vpow2.f32 %v320_v47  ;;  %323 = vadd.xlane.f32.xlu2 %v322_v48 }
 0x23c   :  { %v226_v49 = vpop.xlane.xlu1 %225 }
 0x23d   :  { %v228_v50 = vsub.f32 %v219_v33, %v226_v49 }
 0x23f   :  { %v1749_v51 = vpop.eup %1428  ;;  %v231_v52 = vmul.f32 1.442695, %v228_v50 }
 0x240   :  { %v325_v53 = vsel %vm220_vm2, %v1749_v51, 0.0 }
 0x241   :  { %1430 = vpow2.f32 %v231_v52  ;;  %326 = vadd.xlane.f32.xlu0 %v325_v53 }
 0x247   :  { %v1753_v54 = vpop.eup %1430 }
 0x248   :  { %v236_v55 = vsel %vm220_vm2, %v1753_v54, 0.0 }
 0x249   :  { %237 = vadd.xlane.f32.xlu1 %v236_v55 }
 0x251   :  { %856 = vrot.lane.b32.xlu2 %v1699_v7, %s1630_s17 }
 0x254   :  { %v851_v22 = vpop.permute.xlu1 %850 }
 0x255   :  { %854 = vrot.lane.b32.xlu0 %v1694_v6, %s1630_s17 }
 0x259   :  { %852 = vrot.lane.b32.xlu2 %v1699_v7, %s1629_s16 }
 0x261   :  { %543 = vrot.lane.b32.xlu2 %v1694_v6, %s1628_s15 }
 0x262   :  { %547 = vrot.lane.b32.xlu1 %v1694_v6, %s1626_s2 }
 0x26a   :  { %732 = vrot.lane.b32.xlu1 %v1687_v4, %s1630_s17 }
 0x27f   :  { %441 = vmax.xlane.f32.xlu0 %v440_v62 }
 0x293   :  { %549 = vrot.lane.b32.xlu0 %v1699_v7, %s1626_s2 }
 0x29b   :  { %545 = vrot.lane.b32.xlu0 %v1699_v7, %s1628_s15 }
 0x29c   :  { %v235_v1 = vpop.xlane.xlu2 %234 }
 0x29d   :  { %1432 = vrcp.f32 %v235_v1  ;;  %v250_v12 = vand.u32 2147483648, %v235_v1  ;;  %v248_v13 = vand.u32 2147483647, %v235_v1  ;;  %vm244_vm4 = vweird.f32 %v235_v1 }
 0x29f   :  { %v251_v15 = vor.u32 1.1754944e-38, %v250_v12  ;;  %vm249_vm6 = vcmp.eq.f32.partialorder %v248_v13, 8.507059e+37 }
 0x2a3   :  { %v1433_v8 = vpop.eup %1432  ;;  %734 = vrot.lane.b32.xlu0 %v1689_v5, %s1630_s17 }
 0x2a4   :  { %v240_v9 = vmul.f32 %v1433_v8, %v235_v1  ;;  %vm245_vm3 = vweird.f32 %v1433_v8 }
 0x2a5   :  { %vm246_vm5 = vmor %vm244_vm4, %vm245_vm3 }
 0x2a6   :  { %v241_v10 = vsub.f32 1.0, %v240_v9 }
 0x2a8   :  { %v242_v11 = vmul.f32 %v1433_v8, %v241_v10 }
 0x2aa   :  { %v243_v14 = vadd.f32 %v1433_v8, %v242_v11 }
 0x2ab   :  { %730 = vrot.lane.b32.xlu0 %v1689_v5, %s1629_s16 }
 0x2ac   :  { %v324_v16 = vpop.xlane.xlu2 %323  ;;  %v247_v18 = vsel %vm246_vm5, %v1433_v8, %v243_v14 }
 0x2ad   :  { %1434 = vrcp.f32 %v324_v16  ;;  %v252_v19 = vsel %vm249_vm6, %v251_v15, %v247_v18  ;;  %v339_v27 = vand.u32 2147483648, %v324_v16  ;;  %v337_v30 = vand.u32 2147483647, %v324_v16 }
 0x2ae   :  { %v253_v20 = vmul.f32 %v1741_v39, %v252_v19  ;;  %vm333_vm8 = vweird.f32 %v324_v16 }
 0x2af   :  { %v340_v33 = vor.u32 1.1754944e-38, %v339_v27  ;;  %vm338_vm10 = vcmp.eq.f32.partialorder %v337_v30, 8.507059e+37 }
 0x2b0   :  { %1337 = vmatmul.msk.f32.vlgmr.msrb.gmra.mxu1 %vm220_vm2, %v253_v20 }
 0x2b3   :  { %v1435_v21 = vpop.eup %1434 }
 0x2b4   :  { %v329_v23 = vmul.f32 %v1435_v21, %v324_v16  ;;  %v857_v24 = vpop.permute.xlu2 %856  ;;  %v327_v25 = vpop.xlane.xlu0 %326  ;;  %vm334_vm7 = vweird.f32 %v1435_v21 }
 0x2b5   :  { %1436 = vrcp.f32 %v327_v25  ;;  %1363 = vmatpush.xpose.msk.msrb.mxu1 %vm184_vm1, %v857_v24  ;;  %vm335_vm9 = vmor %vm333_vm8, %vm334_vm7  ;;  %v354_v41 = vand.u32 2147483648, %v327_v25  ;;  %v352_v43 = vand.u32 2147483647, %v327_v25  ;;  %vm348_vm12 = vweird.f32 %v327_v25 }
 0x2b6   :  { %v330_v26 = vsub.f32 1.0, %v329_v23 }
 0x2b7   :  { %v355_v47 = vor.u32 1.1754944e-38, %v354_v41  ;;  %vm353_vm14 = vcmp.eq.f32.partialorder %v352_v43, 8.507059e+37 }
 0x2b8   :  { %v331_v29 = vmul.f32 %v1435_v21, %v330_v26 }
 0x2ba   :  { %v332_v31 = vadd.f32 %v1435_v21, %v331_v29  ;;  %v433_v29 = vmul.f32 0.35355338, %v1765_v58 }
 0x2bb   :  { %v1437_v32 = vpop.eup %1436 }
 0x2bc   :  { %v336_v34 = vsel %vm335_vm9, %v1435_v21, %v332_v31  ;;  %v344_v35 = vmul.f32 %v1437_v32, %v327_v25  ;;  %v238_v36 = vpop.xlane.xlu1 %237  ;;  %vm349_vm11 = vweird.f32 %v1437_v32  ;;  %v853_v1 = vpop.permute.xlu2 %852 }
 0x2bd   :  { %v341_v38 = vsel %vm338_vm10, %v340_v33, %v336_v34  ;;  %1438 = vrcp.f32 %v238_v36  ;;  %vm350_vm13 = vmor %vm348_vm12, %vm349_vm11  ;;  %v263_v57 = vand.u32 2147483647, %v238_v36  ;;  %vm259_vm3 = vweird.f32 %v238_v36 }
 0x2be   :  { %v345_v39 = vsub.f32 1.0, %v344_v35  ;;  %v342_v40 = vmul.f32 %v1745_v46, %v341_v38  ;;  %v265_v46 = vand.u32 2147483648, %v238_v36  ;;  %v1400_v35 = vld [vmem:[#allocation7 + $0x28] sm:$0xff] }
 0x2bf   :  { %vm264_vm5 = vcmp.eq.f32.partialorder %v263_v57, 8.507059e+37 }
 0x2c0   :  { %v346_v42 = vmul.f32 %v1437_v32, %v345_v39  ;;  %1345 = vmatmul.msk.f32.vlgmr.msra.gmra.mxu1 %vm220_vm2, %v342_v40  ;;  %v266_v60 = vor.u32 1.1754944e-38, %v265_v46 }
 0x2c2   :  { %v347_v44 = vadd.f32 %v1437_v32, %v346_v42 }
 0x2c3   :  { %v1439_v45 = vpop.eup %1438 }
 0x2c4   :  { %v255_v48 = vmul.f32 %v1439_v45, %v238_v36  ;;  %v351_v49 = vsel %vm350_vm13, %v1437_v32, %v347_v44  ;;  %vm260_vm15 = vweird.f32 %v1439_v45  ;;  %v544_v14 = vpop.permute.xlu2 %543  ;;  %v1821_v32 = vadd.f32 %v433_v29, %v1723_v17  ;;  %v1399_v36 = vld [vmem:[#allocation7 + $0x20] sm:$0xff] }
 0x2c5   :  { %v356_v50 = vsel %vm353_vm14, %v355_v47, %v351_v49  ;;  %vm261_vm4 = vmor %vm259_vm3, %vm260_vm15 }
 0x2c6   :  { %v256_v52 = vsub.f32 1.0, %v255_v48  ;;  %v357_v53 = vmul.f32 %v1749_v51, %v356_v50  ;;  %v1397_v51 = vld [vmem:[#allocation7 + $0x10] sm:$0xff]  ;;  %v437_v33 = vsel %vm220_vm2, %v1821_v32, -inf }
 0x2c7   :  { %v855_v55 = vpop.permute.xlu0 %854  ;;  %382 = vmatpush.bf16.msrb.mxu2 %v1397_v51 }
 0x2c8   :  { %v257_v56 = vmul.f32 %v1439_v45, %v256_v52  ;;  %1346 = vmatmul.msk.f32.gmra.mxu1 %vm220_vm2, %v357_v53 }
 0x2c9   :  { %1364 = vmatpush.xpose.msk.msrb.mxu1 %vm184_vm1, %v855_v55 }
 0x2ca   :  { %v258_v59 = vadd.f32 %v1439_v45, %v257_v56  ;;  %1329 = vmatmul.msk.bf16.vlgmr.msrb.gmra.mxu2 %vm115_vm0, %v1679_v2 }
 0x2cc   :  { %v262_v62 = vsel %vm261_vm4, %v1439_v45, %v258_v59 }
 0x2cd   :  { %v267_v63 = vsel %vm264_vm5, %v266_v60, %v262_v62 }
 0x2ce   :  { %v268_v0 = vmul.f32 %v1753_v54, %v267_v63 }
 0x2d0   :  { %1338 = vmatmul.msk.f32.vlgmr.msra.gmra.mxu3 %vm220_vm2, %v268_v0  ;;  %1365 = vmatmul.msk.f32.vlgmr.msrb.gmra.mxu1 %vm184_vm1, %v851_v22 }
 0x2d4   :  { %v548_v13 = vpop.permute.xlu1 %547 }
 0x2d8   :  { %1366 = vmatmul.msk.f32.gmra.mxu1 %vm184_vm1, %v853_v1 }
 0x2da   :  { %1330 = vmatmul.msk.bf16.gmra.mxu2 %vm115_vm0, %v1683_v3 }
 0x2f2   :  { %v442_v8 = vpop.xlane.xlu0 %441 }
 0x2f3   :  { %v444_v9 = vsub.f32 %v1769_v61, %v442_v8  ;;  %v733_v61 = vpop.permute.xlu1 %732 }
 0x2f5   :  { %v447_v10 = vmul.f32 1.442695, %v444_v9 }
 0x2f7   :  { %1440 = vpow2.f32 %v447_v10 }
 0x2fd   :  { %v1797_v54 = vpop.eup %1440 }
 0x2fe   :  { %v452_v11 = vsel %vm220_vm2, %v1797_v54, 0.0 }
 0x2ff   :  { %453 = vadd.xlane.f32.xlu2 %v452_v11 }
 0x305   :  { %v550_v12 = vpop.permute.xlu0 %549 }
 0x306   :  { %1339 = vmatpush.xpose.msk.msrb.mxu3 %vm184_vm1, %v550_v12 }
 0x30a   :  { %1340 = vmatpush.xpose.msk.msrb.mxu3 %vm184_vm1, %v548_v13 }
 0x30d   :  { %v546_v15 = vpop.permute.xlu0 %545  ;;  %1341 = vmatmul.msk.f32.vlgmr.msrb.gmra.mxu3 %vm184_vm1, %v544_v14 }
 0x315   :  { %v735_v16 = vpop.permute.xlu0 %734  ;;  %1342 = vmatmul.msk.f32.gmra.mxu3 %vm184_vm1, %v546_v15 }
 0x316   :  { %1357 = vmatpush.xpose.msk.msra.mxu3 %vm184_vm1, %v735_v16 }
 0x317   :  { %728 = vrot.lane.b32.xlu2 %v1687_v4, %s1629_s16 }
 0x31a   :  { %1358 = vmatpush.xpose.msk.msra.mxu3 %vm184_vm1, %v733_v61 }
 0x31d   :  { %v731_v47 = vpop.permute.xlu0 %730 }
 0x32d   :  { %v1809_v18 = vpop.f32.mrf.mxu1 }
 0x33d   :  { %v1811_v19 = vpop.f32.mrf.mxu1 }
 0x345   :  { %v1813_v20 = vpop.f32.mrf.mxu1 }
 0x34d   :  { %v883_v21 = vpop.f32.mrf.mxu1  ;;  %v384_v31 = vpop.f32.mrf.mxu2 }
 0x34e   :  { %v889_v22 = vmul.f32 0.35355338, %v883_v21 }
 0x350   :  { %v891_v23 = vadd.f32 %v889_v22, %v1723_v17 }
 0x352   :  { %v893_v24 = vsel %vm220_vm2, %v891_v23, -inf }
 0x353   :  { %894 = vmax.xlane.f32.xlu1 %v893_v24  ;;  %v1841_v50 = vpop.f32.mrf.mxu3 }
 0x355   :  { %v886_v25 = vpop.f32.mrf.mxu1  ;;  %v386_v34 = vpop.f32.mrf.mxu2 }
 0x356   :  { %v890_v26 = vmul.f32 0.35355338, %v886_v25  ;;  %1403 = vmatpush.msra.mxu2 %v386_v34  ;;  %505 = vmatpush.msrb.mxu0 %v386_v34 }
 0x358   :  { %v892_v27 = vadd.f32 %v890_v26, %v1729_v28  ;;  %1404 = vmatpush.msra.mxu2 %v384_v31  ;;  %506 = vmatpush.msrb.mxu0 %v384_v31 }
 0x35a   :  { %v896_v30 = vsel %vm220_vm2, %v892_v27, -inf  ;;  %715 = vmatpush.bf16.msrb.mxu2 %v1400_v35 }
 0x35b   :  { %897 = vmax.xlane.f32.xlu2 %v896_v30 }
 0x35d   :  { %v389_v0 = vpop.f32.mrf.mxu2 }
 0x35e   :  { %716 = vmatpush.bf16.msrb.mxu2 %v1399_v36 }
 0x363   :  { %438 = vmax.xlane.f32.xlu2 %v437_v33 }
 0x365   :  { %v391_v8 = vpop.f32.mrf.mxu2 }
 0x366   :  { %654 = vmatpush.msra.mxu0 %v391_v8 }
 0x368   :  { %655 = vmatpush.msra.mxu0 %v389_v0 }
 0x36c   :  { %1014 = vrot.lane.b32.xlu1 %v1689_v5, %s1631_s18 }
 0x372   :  { %v454_v58 = vpop.xlane.xlu2 %453 }
 0x373   :  { %1442 = vrcp.f32 %v454_v58  ;;  %v481_v41 = vand.u32 2147483648, %v454_v58  ;;  %v479_v43 = vand.u32 2147483647, %v454_v58  ;;  %vm475_vm7 = vweird.f32 %v454_v58 }
 0x374   :  { %1134 = vrot.lane.b32.xlu1 %v1694_v6, %s1631_s18 }
 0x375   :  { %v482_v45 = vor.u32 1.1754944e-38, %v481_v41  ;;  %vm480_vm9 = vcmp.eq.f32.partialorder %v479_v43, 8.507059e+37 }
 0x379   :  { %v1443_v37 = vpop.eup %1442 }
 0x37a   :  { %v471_v38 = vmul.f32 %v1443_v37, %v454_v58  ;;  %v729_v39 = vpop.permute.xlu2 %728  ;;  %vm476_vm6 = vweird.f32 %v1443_v37 }
 0x37b   :  { %1136 = vrot.lane.b32.xlu2 %v1699_v7, %s1631_s18  ;;  %1359 = vmatmul.msk.f32.vlgmr.msra.gmra.mxu3 %vm184_vm1, %v729_v39  ;;  %vm477_vm8 = vmor %vm475_vm7, %vm476_vm6 }
 0x37c   :  { %v472_v40 = vsub.f32 1.0, %v471_v38  ;;  %1130 = vrot.lane.b32.xlu1 %v1694_v6, %s1632_s19 }
 0x37e   :  { %v473_v42 = vmul.f32 %v1443_v37, %v472_v40 }
 0x380   :  { %v474_v44 = vadd.f32 %v1443_v37, %v473_v42 }
 0x382   :  { %v478_v48 = vsel %vm477_vm8, %v1443_v37, %v474_v44 }
 0x383   :  { %v483_v49 = vsel %vm480_vm9, %v482_v45, %v478_v48  ;;  %1008 = vrot.lane.b32.xlu2 %v1687_v4, %s1632_s19  ;;  %1360 = vmatmul.msk.f32.gmra.mxu3 %vm184_vm1, %v731_v47 }
 0x384   :  { %1010 = vrot.lane.b32.xlu1 %v1689_v5, %s1632_s19  ;;  %v484_v6 = vmul.f32 %v1797_v54, %v483_v49 }
 0x386   :  { %1336 = vmatmul.msk.f32.vlgmr.msra.gmra.mxu2 %vm220_vm2, %v484_v6 }
 0x38e   :  { %1355 = vmatmul.msk.bf16.vlgmr.msrb.gmra.mxu2 %vm115_vm0, %v1679_v2 }
 0x390   :  { %v576_v52 = vpop.f32.mrf.mxu3 }
 0x391   :  { %v582_v53 = vmul.f32 0.35355338, %v576_v52 }
 0x393   :  { %v584_v46 = vadd.f32 %v582_v53, %v1723_v17 }
 0x395   :  { %v586_v55 = vsel %vm220_vm2, %v584_v46, -inf }
 0x396   :  { %587 = vmax.xlane.f32.xlu0 %v586_v55 }
 0x398   :  { %v579_v9 = vpop.f32.mrf.mxu3 }
 0x399   :  { %v583_v15 = vmul.f32 0.35355338, %v579_v9 }
 0x39e   :  { %1356 = vmatmul.msk.bf16.gmra.mxu2 %vm115_vm0, %v1683_v3 }
 0x3c6   :  { %v895_v5 = vpop.xlane.xlu1 %894 }
 0x3c7   :  { %v899_v56 = vsub.f32 %v891_v23, %v895_v5 }
 0x3c9   :  { %v901_v57 = vmul.f32 1.442695, %v899_v56 }
 0x3cb   :  { %1444 = vpow2.f32 %v901_v57 }
 0x3ce   :  { %v898_v59 = vpop.xlane.xlu2 %897 }
 0x3cf   :  { %v900_v60 = vsub.f32 %v892_v27, %v898_v59 }
 0x3d1   :  { %v1849_v62 = vpop.eup %1444  ;;  %v903_v63 = vmul.f32 1.442695, %v900_v60 }
 0x3d2   :  { %v905_v2 = vsel %vm220_vm2, %v1849_v62, 0.0 }
 0x3d3   :  { %1446 = vpow2.f32 %v903_v63  ;;  %906 = vadd.xlane.f32.xlu0 %v905_v2 }
 0x3d6   :  { %v439_v13 = vpop.xlane.xlu2 %438 }
 0x3d7   :  { %v443_v14 = vsub.f32 %v1821_v32, %v439_v13 }
 0x3d9   :  { %v1853_v51 = vpop.eup %1446 }
 0x3da   :  { %v908_v3 = vsel %vm220_vm2, %v1853_v51, 0.0 }
 0x3db   :  { %909 = vadd.xlane.f32.xlu1 %v908_v3 }
 0x3de   :  { %v1015_v1 = vpop.permute.xlu1 %1014  ;;  %v1137_v58 = vpop.permute.xlu2 %1136 }
 0x3df   :  { %1379 = vmatpush.xpose.msk.msra.mxu1 %vm184_vm1, %v1015_v1 }
 0x3e6   :  { %v1135_v37 = vpop.permute.xlu1 %1134  ;;  %v1009_v2 = vpop.permute.xlu2 %1008 }
 0x3e7   :  { %1012 = vrot.lane.b32.xlu0 %v1687_v4, %s1631_s18  ;;  %v445_v4 = vmul.f32 1.442695, %v443_v14 }
 0x3e9   :  { %1448 = vpow2.f32 %v445_v4 }
 0x3ee   :  { %v1131_v38 = vpop.permute.xlu1 %1130 }
 0x3ef   :  { %v1877_v26 = vpop.eup %1448 }
 0x3f0   :  { %v449_v29 = vsel %vm220_vm2, %v1877_v26, 0.0 }
 0x3f4   :  { %1132 = vrot.lane.b32.xlu1 %v1699_v7, %s1632_s19  ;;  %v1871_v7 = vadd.f32 %v583_v15, %v1729_v28 }
 0x3f6   :  { %v589_v22 = vsel %vm220_vm2, %v1871_v7, -inf  ;;  %v1011_v39 = vpop.permute.xlu1 %1010 }
 0x3fe   :  { %v761_v10 = vpop.f32.mrf.mxu3 }
 0x3ff   :  { %v767_v54 = vmul.f32 0.35355338, %v761_v10 }
 0x401   :  { %v1863_v11 = vadd.f32 %v767_v54, %v1723_v17 }
 0x403   :  { %v771_v12 = vsel %vm220_vm2, %v1863_v11, -inf }
 0x404   :  { %772 = vmax.xlane.f32.xlu2 %v771_v12 }
 0x406   :  { %v764_v24 = vpop.f32.mrf.mxu3 }
 0x407   :  { %v768_v27 = vmul.f32 0.35355338, %v764_v24 }
 0x409   :  { %v1868_v16 = vpop.f32.mrf.mxu2  ;;  %v588_v61 = vpop.xlane.xlu0 %587  ;;  %v1884_v31 = vadd.f32 %v768_v27, %v1729_v28 }
 0x40a   :  { %v592_v21 = vsub.f32 %v584_v46, %v588_v61 }
 0x40b   :  { %v774_v33 = vsel %vm220_vm2, %v1884_v31, -inf }
 0x40c   :  { %v594_v25 = vmul.f32 1.442695, %v592_v21 }
 0x40e   :  { %1450 = vpow2.f32 %v594_v25 }
 0x411   :  { %v1875_v23 = vpop.f32.mrf.mxu2  ;;  %590 = vmax.xlane.f32.xlu0 %v589_v22 }
 0x414   :  { %v1886_v32 = vpop.eup %1450 }
 0x415   :  { %v598_v34 = vsel %vm220_vm2, %v1886_v32, 0.0 }
 0x419   :  { %v1881_v30 = vpop.f32.mrf.mxu2  ;;  %450 = vadd.xlane.f32.xlu0 %v449_v29 }
 0x41e   :  { %775 = vmax.xlane.f32.xlu1 %v774_v33 }
 0x421   :  { %v723_v35 = vpop.f32.mrf.mxu2  ;;  %599 = vadd.xlane.f32.xlu0 %v598_v34 }
 0x429   :  { %v725_v36 = vpop.f32.mrf.mxu2 }
 0x42a   :  { %961 = vmatpush.msrb.mxu3 %v725_v36 }
 0x42c   :  { %962 = vmatpush.msrb.mxu3 %v723_v35 }
 0x42e   :  { %1385 = vmatpush.xpose.msk.msra.mxu3 %vm184_vm1, %v1137_v58 }
 0x432   :  { %1386 = vmatpush.xpose.msk.msra.mxu3 %vm184_vm1, %v1135_v37 }
 0x446   :  { %v907_v40 = vpop.xlane.xlu0 %906 }
 0x447   :  { %1452 = vrcp.f32 %v907_v40  ;;  %v922_v45 = vand.u32 2147483648, %v907_v40  ;;  %v920_v48 = vand.u32 2147483647, %v907_v40  ;;  %vm916_vm11 = vweird.f32 %v907_v40 }
 0x449   :  { %v923_v52 = vor.u32 1.1754944e-38, %v922_v45  ;;  %vm921_vm13 = vcmp.eq.f32.partialorder %v920_v48, 8.507059e+37 }
 0x44d   :  { %v1453_v41 = vpop.eup %1452 }
 0x44e   :  { %v912_v42 = vmul.f32 %v1453_v41, %v907_v40  ;;  %v910_v43 = vpop.xlane.xlu1 %909  ;;  %vm917_vm10 = vweird.f32 %v1453_v41 }
 0x44f   :  { %1454 = vrcp.f32 %v910_v43  ;;  %vm918_vm12 = vmor %vm916_vm11, %vm917_vm10  ;;  %v937_v57 = vand.u32 2147483648, %v910_v43  ;;  %v935_v63 = vand.u32 2147483647, %v910_v43  ;;  %vm931_vm15 = vweird.f32 %v910_v43 }
 0x450   :  { %v913_v44 = vsub.f32 1.0, %v912_v42 }
 0x451   :  { %v938_v3 = vor.u32 1.1754944e-38, %v937_v57  ;;  %vm936_vm4 = vcmp.eq.f32.partialorder %v935_v63, 8.507059e+37 }
 0x452   :  { %v914_v47 = vmul.f32 %v1453_v41, %v913_v44 }
 0x454   :  { %v915_v49 = vadd.f32 %v1453_v41, %v914_v47 }
 0x455   :  { %v1455_v6 = vpop.eup %1454 }
 0x456   :  { %v919_v53 = vsel %vm918_vm12, %v1453_v41, %v915_v49  ;;  %v927_v46 = vmul.f32 %v1455_v6, %v910_v43  ;;  %vm932_vm14 = vweird.f32 %v1455_v6 }
 0x457   :  { %v924_v55 = vsel %vm921_vm13, %v923_v52, %v919_v53  ;;  %vm933_vm3 = vmor %vm931_vm15, %vm932_vm14 }
 0x458   :  { %v928_v5 = vsub.f32 1.0, %v927_v46  ;;  %v925_v56 = vmul.f32 %v1849_v62, %v924_v55 }
 0x459   :  { %v1013_v59 = vpop.permute.xlu0 %1012 }
 0x45a   :  { %v929_v60 = vmul.f32 %v1455_v6, %v928_v5  ;;  %1367 = vmatmul.msk.f32.vlgmr.msrb.gmra.mxu3 %vm220_vm2, %v925_v56  ;;  %1380 = vmatpush.xpose.msk.msra.mxu1 %vm184_vm1, %v1013_v59 }
 0x45c   :  { %v930_v0 = vadd.f32 %v1455_v6, %v929_v60 }
 0x45d   :  { %1381 = vmatmul.msk.f32.vlgmr.msra.gmra.mxu1 %vm184_vm1, %v1009_v2 }
 0x45e   :  { %v934_v1 = vsel %vm933_vm3, %v1455_v6, %v930_v0 }
 0x45f   :  { %v939_v8 = vsel %vm936_vm4, %v938_v3, %v934_v1 }
 0x460   :  { %v940_v62 = vmul.f32 %v1853_v51, %v939_v8 }
 0x462   :  { %1368 = vmatmul.msk.f32.gmra.mxu3 %vm220_vm2, %v940_v62 }
 0x465   :  { %1382 = vmatmul.msk.f32.gmra.mxu1 %vm184_vm1, %v1011_v39 }
 0x466   :  { %v1133_v9 = vpop.permute.xlu1 %1132 }
 0x46a   :  { %1387 = vmatmul.msk.f32.vlgmr.msra.gmra.mxu3 %vm184_vm1, %v1131_v38 }
 0x472   :  { %1388 = vmatmul.msk.f32.gmra.mxu3 %vm184_vm1, %v1133_v9 }
 0x477   :  { %v773_v10 = vpop.xlane.xlu2 %772 }
 0x478   :  { %v777_v54 = vsub.f32 %v1863_v11, %v773_v10 }
 0x47a   :  { %v779_v12 = vmul.f32 1.442695, %v777_v54 }
 0x47c   :  { %1456 = vpow2.f32 %v779_v12 }
 0x482   :  { %v1904_v13 = vpop.eup %1456 }
 0x483   :  { %v783_v14 = vsel %vm220_vm2, %v1904_v13, 0.0 }
 0x484   :  { %784 = vadd.xlane.f32.xlu0 %v783_v14  ;;  %v591_v51 = vpop.xlane.xlu0 %590  ;;  %v1402_v14 = vld [vmem:[#allocation7 + $0x38] sm:$0xff] }
 0x485   :  { %v593_v15 = vsub.f32 %v1871_v7, %v591_v51  ;;  %v1401_v51 = vld [vmem:[#allocation7 + $0x30] sm:$0xff] }
 0x487   :  { %v596_v4 = vmul.f32 1.442695, %v593_v15 }
 0x489   :  { %1458 = vpow2.f32 %v596_v4 }
 0x48c   :  { %v451_v61 = vpop.xlane.xlu0 %450 }
 0x48d   :  { %1460 = vrcp.f32 %v451_v61  ;;  %v466_v7 = vand.u32 2147483648, %v451_v61  ;;  %v464_v36 = vand.u32 2147483647, %v451_v61  ;;  %vm460_vm5 = vweird.f32 %v451_v61 }
 0x48f   :  { %v1909_v21 = vpop.eup %1458  ;;  %v467_v38 = vor.u32 1.1754944e-38, %v466_v7  ;;  %vm465_vm7 = vcmp.eq.f32.partialorder %v464_v36, 8.507059e+37 }
 0x490   :  { %v601_v11 = vsel %vm220_vm2, %v1909_v21, 0.0 }
 0x491   :  { %602 = vadd.xlane.f32.xlu2 %v601_v11  ;;  %v776_v22 = vpop.xlane.xlu1 %775 }
 0x492   :  { %v778_v24 = vsub.f32 %v1884_v31, %v776_v22 }
 0x493   :  { %v1461_v25 = vpop.eup %1460 }
 0x494   :  { %v456_v27 = vmul.f32 %v1461_v25, %v451_v61  ;;  %v781_v29 = vmul.f32 1.442695, %v778_v24  ;;  %v600_v33 = vpop.xlane.xlu0 %599  ;;  %vm461_vm1 = vweird.f32 %v1461_v25 }
 0x495   :  { %1462 = vrcp.f32 %v600_v33  ;;  %vm462_vm6 = vmor %vm460_vm5, %vm461_vm1  ;;  %v615_v45 = vand.u32 2147483648, %v600_v33  ;;  %v613_v48 = vand.u32 2147483647, %v600_v33  ;;  %vm609_vm9 = vweird.f32 %v600_v33 }
 0x496   :  { %v457_v34 = vsub.f32 1.0, %v456_v27  ;;  %1464 = vpow2.f32 %v781_v29 }
 0x497   :  { %v616_v6 = vor.u32 1.1754944e-38, %v615_v45  ;;  %vm614_vm11 = vcmp.eq.f32.partialorder %v613_v48, 8.507059e+37 }
 0x498   :  { %v458_v35 = vmul.f32 %v1461_v25, %v457_v34 }
 0x49a   :  { %v459_v58 = vadd.f32 %v1461_v25, %v458_v35 }
 0x49b   :  { %v1463_v37 = vpop.eup %1462 }
 0x49c   :  { %v1914_v39 = vpop.eup %1464  ;;  %v605_v31 = vmul.f32 %v1463_v37, %v600_v33  ;;  %v463_v40 = vsel %vm462_vm6, %v1461_v25, %v459_v58  ;;  %vm610_vm8 = vweird.f32 %v1463_v37 }
 0x49d   :  { %v786_v41 = vsel %vm220_vm2, %v1914_v39, 0.0  ;;  %v468_v42 = vsel %vm465_vm7, %v467_v38, %v463_v40  ;;  %vm611_vm10 = vmor %vm609_vm9, %vm610_vm8 }
 0x49e   :  { %v606_v43 = vsub.f32 1.0, %v605_v31  ;;  %787 = vadd.xlane.f32.xlu2 %v786_v41  ;;  %v469_v44 = vmul.f32 %v1877_v26, %v468_v42 }
 0x4a0   :  { %v607_v47 = vmul.f32 %v1463_v37, %v606_v43  ;;  %1335 = vmatmul.msk.f32.vlgmr.msrb.gmra.mxu0 %vm220_vm2, %v469_v44 }
 0x4a1   :  { %839 = vmatpush.msrb.mxu0 %v1881_v30 }
 0x4a2   :  { %v608_v49 = vadd.f32 %v1463_v37, %v607_v47 }
 0x4a3   :  { %840 = vmatpush.msrb.mxu0 %v1875_v23 }
 0x4a4   :  { %v612_v52 = vsel %vm611_vm10, %v1463_v37, %v608_v49 }
 0x4a5   :  { %v617_v53 = vsel %vm614_vm11, %v616_v6, %v612_v52 }
 0x4a6   :  { %v618_v46 = vmul.f32 %v1886_v32, %v617_v53 }
 0x4a8   :  { %1343 = vmatmul.msk.f32.vlgmr.msra.gmra.mxu0 %vm220_vm2, %v618_v46  ;;  %v1488_v46 = vld [vmem:[#allocation2] sm:$0xff] }
 0x4a9   :  { %995 = vmatpush.bf16.msra.mxu0 %v1402_v14 }
 0x4ad   :  { %996 = vmatpush.bf16.msra.mxu0 %v1401_v51 }
 0x4da   :  { %v1041_v26 = vpop.f32.mrf.mxu1 }
 0x4db   :  { %v1047_v55 = vmul.f32 0.35355338, %v1041_v26  ;;  %v1489_v26 = vld [vmem:[#allocation2 + $0x8] sm:$0xff] }
 0x4dd   :  { %v1924_v5 = vpop.f32.mrf.mxu3  ;;  %v1927_v56 = vadd.f32 %v1047_v55, %v1723_v17 }
 0x4df   :  { %v1051_v30 = vsel %vm220_vm2, %v1927_v56, -inf }
 0x4e0   :  { %1052 = vmax.xlane.f32.xlu0 %v1051_v30 }
 0x4e2   :  { %v1044_v57 = vpop.f32.mrf.mxu1 }
 0x4e3   :  { %v1048_v23 = vmul.f32 0.35355338, %v1044_v57 }
 0x4e5   :  { %v1931_v59 = vpop.f32.mrf.mxu3  ;;  %v1934_v60 = vadd.f32 %v1048_v23, %v1729_v28 }
 0x4e7   :  { %v1054_v32 = vsel %vm220_vm2, %v1934_v60, -inf }
 0x4e8   :  { %1055 = vmax.xlane.f32.xlu1 %v1054_v32 }
 0x4ed   :  { %v1163_v63 = vpop.f32.mrf.mxu3 }
 0x4ee   :  { %v1169_v2 = vmul.f32 0.35355338, %v1163_v63 }
 0x4f0   :  { %v1939_v0 = vadd.f32 %v1169_v2, %v1723_v17 }
 0x4f2   :  { %v1173_v3 = vsel %vm220_vm2, %v1939_v0, -inf }
 0x4f3   :  { %1174 = vmax.xlane.f32.xlu2 %v1173_v3 }
 0x4f5   :  { %v1166_v1 = vpop.f32.mrf.mxu3 }
 0x4f6   :  { %v1170_v8 = vmul.f32 0.35355338, %v1166_v1 }
 0x4f7   :  { %v785_v10 = vpop.xlane.xlu0 %784 }
 0x4f8   :  { %v1944_v62 = vadd.f32 %v1170_v8, %v1729_v28  ;;  %1466 = vrcp.f32 %v785_v10  ;;  %v800_v35 = vand.u32 2147483648, %v785_v10  ;;  %vm794_vm4 = vweird.f32 %v785_v10 }
 0x4f9   :  { %v798_v58 = vand.u32 2147483647, %v785_v10 }
 0x4fa   :  { %v1176_v9 = vsel %vm220_vm2, %v1944_v62, -inf  ;;  %v801_v40 = vor.u32 1.1754944e-38, %v800_v35 }
 0x4fb   :  { %1177 = vmax.xlane.f32.xlu0 %v1176_v9  ;;  %vm799_vm5 = vcmp.eq.f32.partialorder %v798_v58, 8.507059e+37 }
 0x4fe   :  { %v1467_v12 = vpop.eup %1466 }
 0x4ff   :  { %v790_v17 = vmul.f32 %v1467_v12, %v785_v10  ;;  %vm795_vm15 = vweird.f32 %v1467_v12 }
 0x500   :  { %vm796_vm1 = vmor %vm794_vm4, %vm795_vm15 }
 0x501   :  { %v791_v4 = vsub.f32 1.0, %v790_v17 }
 0x503   :  { %v792_v22 = vmul.f32 %v1467_v12, %v791_v4 }
 0x504   :  { %v603_v54 = vpop.xlane.xlu2 %602 }
 0x505   :  { %1468 = vrcp.f32 %v603_v54  ;;  %v630_v28 = vand.u32 2147483648, %v603_v54  ;;  %v628_v25 = vand.u32 2147483647, %v603_v54  ;;  %vm624_vm13 = vweird.f32 %v603_v54 }
 0x506   :  { %v793_v34 = vadd.f32 %v1467_v12, %v792_v22 }
 0x507   :  { %v631_v33 = vor.u32 1.1754944e-38, %v630_v28  ;;  %vm629_vm3 = vcmp.eq.f32.partialorder %v628_v25, 8.507059e+37 }
 0x508   :  { %v797_v31 = vsel %vm796_vm1, %v1467_v12, %v793_v34 }
 0x509   :  { %v802_v42 = vsel %vm799_vm5, %v801_v40, %v797_v31 }
 0x50a   :  { %v803_v47 = vmul.f32 %v1904_v13, %v802_v42 }
 0x50b   :  { %v1469_v15 = vpop.eup %1468 }
 0x50c   :  { %v620_v61 = vmul.f32 %v1469_v15, %v603_v54  ;;  %vm625_vm12 = vweird.f32 %v1469_v15 }
 0x50d   :  { %vm626_vm14 = vmor %vm624_vm13, %vm625_vm12 }
 0x50e   :  { %v621_v11 = vsub.f32 1.0, %v620_v61 }
 0x510   :  { %v622_v24 = vmul.f32 %v1469_v15, %v621_v11  ;;  %v541_v11 = vadd.f32 %v1841_v50, %v1868_v16 }
 0x511   :  { %v788_v27 = vpop.xlane.xlu2 %787 }
 0x512   :  { %1470 = vrcp.f32 %v788_v27  ;;  %v623_v29 = vadd.f32 %v1469_v15, %v622_v24  ;;  %v815_v45 = vand.u32 2147483648, %v788_v27  ;;  %v813_v48 = vand.u32 2147483647, %v788_v27 }
 0x513   :  { %vm809_vm7 = vweird.f32 %v788_v27 }
 0x514   :  { %v627_v7 = vsel %vm626_vm14, %v1469_v15, %v623_v29  ;;  %vm814_vm9 = vcmp.eq.f32.partialorder %v813_v48, 8.507059e+37 }
 0x515   :  { %v632_v36 = vsel %vm629_vm3, %v631_v33, %v627_v7 }
 0x516   :  { %v633_v37 = vmul.f32 %v1909_v21, %v632_v36  ;;  %v816_v21 = vor.u32 1.1754944e-38, %v815_v45 }
 0x518   :  { %v1471_v38 = vpop.eup %1470  ;;  %1344 = vmatmul.msk.f32.gmra.mxu0 %vm220_vm2, %v633_v37 }
 0x519   :  { %v805_v41 = vmul.f32 %v1471_v38, %v788_v27  ;;  %vm810_vm6 = vweird.f32 %v1471_v38 }
 0x51a   :  { %vm811_vm8 = vmor %vm809_vm7, %vm810_vm6 }
 0x51b   :  { %v806_v43 = vsub.f32 1.0, %v805_v41 }
 0x51d   :  { %v807_v44 = vmul.f32 %v1471_v38, %v806_v43  ;;  %v508_v14 = vpop.f32.mrf.mxu0 }
 0x51f   :  { %v808_v49 = vadd.f32 %v1471_v38, %v807_v44 }
 0x520   :  { %1361 = vmatmul.msk.f32.vlgmr.msrb.gmra.mxu0 %vm220_vm2, %v803_v47 }
 0x521   :  { %v812_v6 = vsel %vm811_vm8, %v1471_v38, %v808_v49 }
 0x522   :  { %v817_v52 = vsel %vm814_vm9, %v816_v21, %v812_v6 }
 0x523   :  { %v818_v53 = vmul.f32 %v1914_v39, %v817_v52 }
 0x525   :  { %v1973_v51 = vpop.f32.mrf.mxu0 }
 0x528   :  { %1362 = vmatmul.msk.f32.gmra.mxu0 %vm220_vm2, %v818_v53 }
 0x530   :  { %1377 = vmatmul.msk.bf16.vlgmr.msra.gmra.mxu0 %vm115_vm0, %v1488_v46 }
 0x540   :  { %1378 = vmatmul.msk.bf16.gmra.mxu0 %vm115_vm0, %v1489_v26 }
 0x553   :  { %v1053_v13 = vpop.xlane.xlu0 %1052 }
 0x554   :  { %v1057_v55 = vsub.f32 %v1927_v56, %v1053_v13 }
 0x556   :  { %v1059_v30 = vmul.f32 1.442695, %v1057_v55 }
 0x558   :  { %1472 = vpow2.f32 %v1059_v30 }
 0x55b   :  { %v1056_v57 = vpop.xlane.xlu1 %1055 }
 0x55c   :  { %v1058_v23 = vsub.f32 %v1934_v60, %v1056_v57 }
 0x55e   :  { %v1473_v32 = vpop.eup %1472  ;;  %v1061_v63 = vmul.f32 1.442695, %v1058_v23 }
 0x55f   :  { %v1063_v39 = vsel %vm220_vm2, %v1473_v32, 0.0 }
 0x560   :  { %1474 = vpow2.f32 %v1061_v63  ;;  %1064 = vadd.xlane.f32.xlu2 %v1063_v39 }
 0x566   :  { %v1959_v2 = vpop.eup %1474  ;;  %v1175_v3 = vpop.xlane.xlu2 %1174 }
 0x567   :  { %v1179_v1 = vsub.f32 %v1939_v0, %v1175_v3  ;;  %v1066_v8 = vsel %vm220_vm2, %v1959_v2, 0.0 }
 0x568   :  { %1067 = vadd.xlane.f32.xlu0 %v1066_v8 }
 0x569   :  { %v1181_v56 = vmul.f32 1.442695, %v1179_v1 }
 0x56b   :  { %1476 = vpow2.f32 %v1181_v56 }
 0x56e   :  { %v1178_v9 = vpop.xlane.xlu0 %1177 }
 0x56f   :  { %v1180_v60 = vsub.f32 %v1944_v62, %v1178_v9  ;;  %v538_v62 = vadd.f32 %v1809_v18, %v508_v14 }
 0x571   :  { %v1965_v10 = vpop.eup %1476  ;;  %v1183_v54 = vmul.f32 1.442695, %v1180_v60 }
 0x572   :  { %v1185_v12 = vsel %vm220_vm2, %v1965_v10, 0.0 }
 0x573   :  { %1478 = vpow2.f32 %v1183_v54  ;;  %1186 = vadd.xlane.f32.xlu1 %v1185_v12 }
 0x579   :  { %v1969_v17 = vpop.eup %1478 }
 0x57a   :  { %v1188_v0 = vsel %vm220_vm2, %v1969_v17, 0.0 }
 0x57b   :  { %1189 = vadd.xlane.f32.xlu2 %v1188_v0 }
 0x595   :  { %v1975_v15 = vpop.f32.mrf.mxu0 }
 0x59d   :  { %v842_v4 = vpop.f32.mrf.mxu0 }
 0x59e   :  { %v1978_v61 = vadd.f32 %v842_v4, %v538_v62 }
 0x5a5   :  { %v845_v28 = vpop.f32.mrf.mxu0 }
 0x5a6   :  { %v1982_v22 = vadd.f32 %v845_v28, %v541_v11 }
 0x5ad   :  { %v998_v24 = vpop.f32.mrf.mxu0 }
 0x5b5   :  { %v1000_v25 = vpop.f32.mrf.mxu0 }
 0x5b6   :  { %1119 = vmatpush.msra.mxu2 %v1000_v25  ;;  %v687_v25 = vadd.f32 %v1811_v19, %v1973_v51 }
 0x5b8   :  { %1120 = vmatpush.msra.mxu2 %v998_v24 }
 0x5bd   :  { %v1003_v27 = vpop.f32.mrf.mxu0 }
 0x5c5   :  { %v1005_v29 = vpop.f32.mrf.mxu0 }
 0x5c6   :  { %1241 = vmatpush.msrb.mxu1 %v1005_v29 }
 0x5c8   :  { %1242 = vmatpush.msrb.mxu1 %v1003_v27 }
 0x5d3   :  { %v1065_v33 = vpop.xlane.xlu2 %1064 }
 0x5d4   :  { %1480 = vrcp.f32 %v1065_v33  ;;  %v1080_v36 = vand.u32 2147483648, %v1065_v33  ;;  %v1078_v16 = vand.u32 2147483647, %v1065_v33  ;;  %vm1074_vm11 = vweird.f32 %v1065_v33 }
 0x5d6   :  { %v1081_v38 = vor.u32 1.1754944e-38, %v1080_v36  ;;  %vm1079_vm13 = vcmp.eq.f32.partialorder %v1078_v16, 8.507059e+37 }
 0x5da   :  { %v1481_v18 = vpop.eup %1480 }
 0x5db   :  { %v1070_v34 = vmul.f32 %v1481_v18, %v1065_v33  ;;  %v1068_v7 = vpop.xlane.xlu0 %1067  ;;  %vm1075_vm10 = vweird.f32 %v1481_v18 }
 0x5dc   :  { %1482 = vrcp.f32 %v1068_v7  ;;  %vm1076_vm12 = vmor %vm1074_vm11, %vm1075_vm10  ;;  %v1095_v44 = vand.u32 2147483648, %v1068_v7  ;;  %v1093_v48 = vand.u32 2147483647, %v1068_v7  ;;  %vm1089_vm15 = vweird.f32 %v1068_v7 }
 0x5dd   :  { %v1071_v35 = vsub.f32 1.0, %v1070_v34 }
 0x5de   :  { %v1096_v21 = vor.u32 1.1754944e-38, %v1095_v44  ;;  %vm1094_vm4 = vcmp.eq.f32.partialorder %v1093_v48, 8.507059e+37 }
 0x5df   :  { %v1072_v50 = vmul.f32 %v1481_v18, %v1071_v35 }
 0x5e1   :  { %v1073_v58 = vadd.f32 %v1481_v18, %v1072_v50 }
 0x5e2   :  { %v1483_v37 = vpop.eup %1482 }
 0x5e3   :  { %v1077_v31 = vsel %vm1076_vm12, %v1481_v18, %v1073_v58  ;;  %v1085_v40 = vmul.f32 %v1483_v37, %v1068_v7  ;;  %vm1090_vm14 = vweird.f32 %v1483_v37  ;;  %v690_v7 = vadd.f32 %v1813_v20, %v1975_v15 }
 0x5e4   :  { %v1082_v41 = vsel %vm1079_vm13, %v1081_v38, %v1077_v31  ;;  %vm1091_vm3 = vmor %vm1089_vm15, %vm1090_vm14 }
 0x5e5   :  { %v1086_v42 = vsub.f32 1.0, %v1085_v40  ;;  %v1083_v43 = vmul.f32 %v1473_v32, %v1082_v41  ;;  %v971_v35 = vadd.f32 %v1931_v59, %v690_v7 }
 0x5e6   :  { %v1187_v45 = vpop.xlane.xlu1 %1186 }
 0x5e7   :  { %v1087_v47 = vmul.f32 %v1483_v37, %v1086_v42  ;;  %1484 = vrcp.f32 %v1187_v45  ;;  %1383 = vmatmul.msk.f32.vlgmr.msra.gmra.mxu2 %vm220_vm2, %v1083_v43  ;;  %v1202_v30 = vand.u32 2147483648, %v1187_v45  ;;  %v1200_v23 = vand.u32 2147483647, %v1187_v45 }
 0x5e8   :  { %vm1196_vm5 = vweird.f32 %v1187_v45 }
 0x5e9   :  { %v1088_v49 = vadd.f32 %v1483_v37, %v1087_v47  ;;  %v1203_v39 = vor.u32 1.1754944e-38, %v1202_v30  ;;  %vm1201_vm7 = vcmp.eq.f32.partialorder %v1200_v23, 8.507059e+37 }
 0x5eb   :  { %v1092_v6 = vsel %vm1091_vm3, %v1483_v37, %v1088_v49 }
 0x5ec   :  { %v1097_v52 = vsel %vm1094_vm4, %v1096_v21, %v1092_v6 }
 0x5ed   :  { %v1485_v53 = vpop.eup %1484  ;;  %v1098_v46 = vmul.f32 %v1959_v2, %v1097_v52 }
 0x5ee   :  { %v1192_v26 = vmul.f32 %v1485_v53, %v1187_v45  ;;  %v1190_v13 = vpop.xlane.xlu2 %1189  ;;  %vm1197_vm1 = vweird.f32 %v1485_v53 }
 0x5ef   :  { %1486 = vrcp.f32 %v1190_v13  ;;  %1384 = vmatmul.msk.f32.gmra.mxu2 %vm220_vm2, %v1098_v46  ;;  %vm1198_vm6 = vmor %vm1196_vm5, %vm1197_vm1  ;;  %v1217_v9 = vand.u32 2147483648, %v1190_v13  ;;  %v1215_v54 = vand.u32 2147483647, %v1190_v13  ;;  %vm1211_vm9 = vweird.f32 %v1190_v13 }
 0x5f0   :  { %v1193_v55 = vsub.f32 1.0, %v1192_v26 }
 0x5f1   :  { %v1218_v0 = vor.u32 1.1754944e-38, %v1217_v9  ;;  %vm1216_vm11 = vcmp.eq.f32.partialorder %v1215_v54, 8.507059e+37 }
 0x5f2   :  { %v1194_v57 = vmul.f32 %v1485_v53, %v1193_v55 }
 0x5f4   :  { %v1195_v32 = vadd.f32 %v1485_v53, %v1194_v57 }
 0x5f5   :  { %v1487_v63 = vpop.eup %1486 }
 0x5f6   :  { %v1199_v3 = vsel %vm1198_vm6, %v1485_v53, %v1195_v32  ;;  %v1207_v1 = vmul.f32 %v1487_v63, %v1190_v13  ;;  %vm1212_vm8 = vweird.f32 %v1487_v63 }
 0x5f7   :  { %v1204_v8 = vsel %vm1201_vm7, %v1203_v39, %v1199_v3  ;;  %vm1213_vm10 = vmor %vm1211_vm9, %vm1212_vm8 }
 0x5f8   :  { %v1205_v2 = vmul.f32 %v1965_v10, %v1204_v8  ;;  %v1208_v56 = vsub.f32 1.0, %v1207_v1  ;;  %v1423_v10 = vld [vmem:[%s2015_s3] ss:$0 sm:$0xff]  ;;  %s1633_s3 = smov [#allocation10]  }
 0x5f9   :  { %s1268_s22 = sshll.u32 %s1633_s3, 4  ;;  %s1269_s22 = int_to_ptr.vmem [resolvable:$true] %s1268_s22 }
 0x5fa   :  { %v1209_v60 = vmul.f32 %v1487_v63, %v1208_v56  ;;  %1389 = vmatmul.msk.f32.vlgmr.msrb.gmra.mxu1 %vm220_vm2, %v1205_v2 }
 0x5fc   :  { %v1210_v12 = vadd.f32 %v1487_v63, %v1209_v60 }
 0x5fe   :  { %v1214_v14 = vsel %vm1213_vm10, %v1487_v63, %v1210_v12 }
 0x5ff   :  { %v1219_v62 = vsel %vm1216_vm11, %v1218_v0, %v1214_v14 }
 0x600   :  { %v1220_v4 = vmul.f32 %v1969_v17, %v1219_v62  ;;  %v970_v17 = vadd.f32 %v1924_v5, %v687_v25 }
 0x602   :  { %1390 = vmatmul.msk.f32.gmra.mxu1 %vm220_vm2, %v1220_v4 }
 0x66a   :  { %v1122_v11 = vpop.f32.mrf.mxu2 }
 0x66b   :  { %v1128_v28 = vadd.f32 %v1122_v11, %v1978_v61 }
 0x66d   :  { %v1256_v24 = vadd.f32 %v1423_v10, %v1128_v28 }
 0x66f   :  { %1260 = vst.msk [vmem:[#allocation10] sm:$0xff] %vm115_vm0, %v1256_v24 }
 0x672   :  { %v1125_v27 = vpop.f32.mrf.mxu2 }
 0x673   :  { %v1129_v29 = vadd.f32 %v1125_v27, %v1982_v22 }
 0x675   :  { %v1257_v33 = vadd.f32 %v1423_v10, %v1129_v29 }
 0x677   :  { %1261 = vst.msk [vmem:[#allocation10 + $0x8] sm:$0xff] %vm115_vm0, %v1257_v33  ;;  %v1244_v18 = vpop.f32.mrf.mxu1 }
 0x678   :  { %v1250_v34 = vadd.f32 %v1244_v18, %v970_v17 }
 0x67a   :  { %v1258_v61 = vadd.f32 %v1423_v10, %v1250_v34 }
 0x67c   :  { %1262 = vst.msk [vmem:[#allocation10 + $0x10] sm:$0xff] %vm115_vm0, %v1258_v61 }
 0x67f   :  { %v1247_v36 = vpop.f32.mrf.mxu1 }
 0x680   :  { %v1251_v19 = vadd.f32 %v1247_v36, %v971_v35 }
 0x682   :  { %v1259_v5 = vadd.f32 %v1423_v10, %v1251_v19 }
 0x684   :  { %1263 = vst.msk [vmem:[#allocation10 + $0x18] sm:$0xff] %vm115_vm0, %v1259_v5 }
 0x685   :  { %1276 = dma.vmem_to_hbm [thread:$0]  %s1269_s22, 512, %s1271_s25, [#allocation4], %s1624_s13, %s1624_s13, %s1625_s14  }
 0x686   :  { %1616 = dma.done.wait [#allocation4], 512  }
 0x687   :  { %1617 = vsyncadd [#allocation4], 4294966784 }
 0x688   :  { %1281 = vsyncpa [#allocation3], 1 }
 0x689   :  { %1282 = vsyncpa [#allocation6], 1 }
 0x68a   :  { %1283 = vsyncpa [#allocation9], 1 }
 0x68b   :  { %1284 = vsyncpa [#allocation4], 1 }

</bundles_post_ra>
